<compile_context>
chip_gen: v6e
topology: v6e:2x2x1
jax: 0.10.0
libtpu: 0.0.40
codegen_flags: <defaults>
</compile_context>

<pallas_src>
import functools

import jax
import jax.numpy as jnp
from jax.experimental import pallas as pl
from jax.experimental.pallas import tpu as pltpu


def _largest_divisor(n, cap):
    """Largest tile size <= cap that exactly divides n (no dropped data)."""
    t = min(n, cap)
    while n % t:
        t -= 1
    return t


# --------------------- fused QKV 1x1-conv projection kernel -----------------
def _qkv_proj_kernel(x_ref, w_ref, b_ref, q_ref, k_ref, v_ref, *, d):
    # x: (tm, C) bf16, w: (C, 2d+C) bf16, b: (1, 2d+C) f32 -> f32 accumulate.
    acc = jnp.dot(x_ref[...], w_ref[...], preferred_element_type=jnp.float32)
    acc = acc + b_ref[...]
    q_ref[...] = acc[:, :d].astype(q_ref.dtype)
    k_ref[...] = acc[:, d:2 * d].astype(k_ref.dtype)
    v_ref[...] = acc[:, 2 * d:].astype(v_ref.dtype)


def qkv_projection(x_rows, w_cat, b_cat, d, c):
    m, cin = x_rows.shape
    n_tot = w_cat.shape[1]
    tm = _largest_divisor(m, 256)          # >=2 row blocks keeps both v7x TCs busy
    grid = (m // tm,)
    return pl.pallas_call(
        functools.partial(_qkv_proj_kernel, d=d),
        out_shape=(jax.ShapeDtypeStruct((m, d), jnp.bfloat16),
                   jax.ShapeDtypeStruct((m, d), jnp.bfloat16),
                   jax.ShapeDtypeStruct((m, c), jnp.bfloat16)),
        grid_spec=pltpu.PrefetchScalarGridSpec(
            num_scalar_prefetch=0,
            grid=grid,
            in_specs=[
                pl.BlockSpec((tm, cin), lambda i: (i, 0)),
                pl.BlockSpec((cin, n_tot), lambda i: (0, 0)),
                pl.BlockSpec((1, n_tot), lambda i: (0, 0)),
            ],
            out_specs=(pl.BlockSpec((tm, d), lambda i: (i, 0)),
                       pl.BlockSpec((tm, d), lambda i: (i, 0)),
                       pl.BlockSpec((tm, c), lambda i: (i, 0))),
        ),
        compiler_params=pltpu.CompilerParams(
            dimension_semantics=("parallel",)),
    )(x_rows.astype(jnp.bfloat16),
      w_cat.astype(jnp.bfloat16),
      b_cat.reshape(1, n_tot).astype(jnp.float32))


# --------------------- fused attention (+ residual) kernel ------------------
def _attention_kernel(q_ref, k_ref, v_ref, res_ref, o_ref, *, scale):
    q = q_ref[0]                                     # (tq, d)  bf16
    k = k_ref[0]                                     # (hw, d)  bf16
    v = v_ref[0]                                     # (hw, c)  bf16
    # S = (Q @ K^T) * scale, f32 accumulation on the MXU.
    s = jax.lax.dot_general(
        q, k, dimension_numbers=(((1,), (1,)), ((), ())),
        preferred_element_type=jnp.float32) * scale  # (tq, hw) f32
    # Numerically stable softmax over the key axis (full keys in VMEM).
    m = jnp.max(s, axis=-1, keepdims=True)
    p = jnp.exp(s - m)
    denom = jnp.sum(p, axis=-1, keepdims=True)
    p = p * pl.reciprocal(denom, approx=True)        # EUP slot, ~free
    # O = P @ V (bf16 operands, f32 accumulate), then fused residual add.
    out = jnp.dot(p.astype(v.dtype), v,
                  preferred_element_type=jnp.float32)  # (tq, c) f32
    o_ref[0] = (out + res_ref[0]).astype(o_ref.dtype)


def attention(q, k, v, res, scale):
    b, hw, d = q.shape
    c = v.shape[-1]
    tq = _largest_divisor(hw, 256)
    grid = (b, hw // tq)
    return pl.pallas_call(
        functools.partial(_attention_kernel, scale=scale),
        out_shape=jax.ShapeDtypeStruct((b, hw, c), jnp.float32),
        grid_spec=pltpu.PrefetchScalarGridSpec(
            num_scalar_prefetch=0,
            grid=grid,
            in_specs=[
                pl.BlockSpec((1, tq, d), lambda bi, qi: (bi, qi, 0)),
                pl.BlockSpec((1, hw, d), lambda bi, qi: (bi, 0, 0)),
                pl.BlockSpec((1, hw, c), lambda bi, qi: (bi, 0, 0)),
                pl.BlockSpec((1, tq, c), lambda bi, qi: (bi, qi, 0)),
            ],
            out_specs=pl.BlockSpec((1, tq, c), lambda bi, qi: (bi, qi, 0)),
        ),
        compiler_params=pltpu.CompilerParams(
            dimension_semantics=("parallel", "parallel")),
    )(q, k, v, res)


# ------------------------------ forward pass --------------------------------
def self_attention_forward(x, wq, bq, wk, bk, wv, bv):
    b, c, h, w = x.shape
    assert c % 8 == 0, "in_dim must be divisible by 8 (in_dim // 8 heads dim)"
    d = c // 8
    hw = h * w
    scale = 1.0 / (c ** 0.5)                        # PyTorch: 1 / in_dim**0.5

    # NCHW -> rows of spatial positions (layout glue outside the kernels).
    x_rows = jnp.transpose(x, (0, 2, 3, 1)).reshape(b * hw, c)

    # Concatenate the three 1x1-conv weights: (C, D + D + C).
    w_cat = jnp.concatenate(
        [wq[:, :, 0, 0].T, wk[:, :, 0, 0].T, wv[:, :, 0, 0].T], axis=1)
    b_cat = jnp.concatenate([bq, bk, bv])

    q, k, v = qkv_projection(x_rows, w_cat, b_cat, d, c)   # bf16 outputs
    q = q.reshape(b, hw, d)
    k = k.reshape(b, hw, d)
    v = v.reshape(b, hw, c)

    # The PyTorch tail does `out.permute(0,2,1).reshape(B,C,H,W)`, which
    # reinterprets the contiguous (HW, C) attention output as (C, H, W).
    # The residual add therefore pairs attention element (i, ch) with x's flat
    # element i*C + ch.  Present x in that same reinterpreted layout so the
    # add fuses into the attention kernel epilogue.
    res = x.reshape(b, hw, c)

    out = attention(q, k, v, res, scale)             # (B, HW, C) incl. residual
    return out.reshape(b, c, h, w)


# ------------------------------ pure-JAX reference ---------------------------
def ref_forward(x, wq, bq, wk, bk, wv, bv):
    b, c, h, w = x.shape
    hw = h * w

    def conv1x1(xx, wt, bb):
        return jnp.einsum('bchw,oc->bohw', xx, wt[:, :, 0, 0]) \
            + bb[None, :, None, None]

    query = conv1x1(x, wq, bq).reshape(b, -1, hw).transpose(0, 2, 1)
    key = conv1x1(x, wk, bk).reshape(b, -1, hw)
    value = conv1x1(x, wv, bv).reshape(b, -1, hw).transpose(0, 2, 1)
    attn = jnp.einsum('bid,bdj->bij', query, key) * (1.0 / c ** 0.5)
    attn = jax.nn.softmax(attn, axis=-1)
    value_p = value.transpose(0, 2, 1)                       # (B, C, HW)
    out = jnp.einsum('bcj,bij->bci', value_p, attn)          # (B, C, HW)
    out = out.transpose(0, 2, 1).reshape(b, c, h, w)
    return out + x


if __name__ == "__main__":
    key = jax.random.PRNGKey(0)
    B, C, H, W = 2, 64, 16, 16
    D = C // 8

    kx, kq, kk, kv = jax.random.split(key, 4)

    def conv_init(k, out_c, in_c):
        k1, k2 = jax.random.split(k)
        wt = jax.random.normal(k1, (out_c, in_c, 1, 1), jnp.float32) / jnp.sqrt(in_c)
        bb = jax.random.normal(k2, (out_c,), jnp.float32) * 0.05
        return wt, bb

    x = jax.random.normal(kx, (B, C, H, W), jnp.float32)
    wq, bq = conv_init(kq, D, C)
    wk, bk = conv_init(kk, D, C)
    wv, bv = conv_init(kv, C, C)

    fwd = jax.jit(self_attention_forward)
    out = jax.block_until_ready(fwd(x, wq, bq, wk, bk, wv, bv))

    assert out.shape == (B, C, H, W), out.shape
    assert bool(jnp.all(jnp.isfinite(out)))

    ref = ref_forward(x, wq, bq, wk, bk, wv, bv)
    # bf16 matmul operands (MXU) vs f32 reference -> loose tolerance.
    assert bool(jnp.allclose(out, ref, atol=5e-2, rtol=5e-2)), \
        float(jnp.max(jnp.abs(out - ref)))

    print("KERNEL_OK")
</pallas_src>

<mosaic_0001>
module attributes {stable_mosaic.version = 11 : i64} {
  func.func @_qkv_proj_kernel(%arg0: i32, %arg1: memref<256x64xbf16, #tpu.memory_space<vmem>>, %arg2: memref<64x80xbf16, #tpu.memory_space<vmem>>, %arg3: memref<1x80xf32, #tpu.memory_space<vmem>>, %arg4: memref<256x8xbf16, #tpu.memory_space<vmem>>, %arg5: memref<256x8xbf16, #tpu.memory_space<vmem>>, %arg6: memref<256x64xbf16, #tpu.memory_space<vmem>>) attributes {dimension_semantics = [#tpu.dimension_semantics<parallel>], iteration_bounds = array<i64: 2>, scalar_prefetch = 0 : i64, scratch_operands = 0 : i64, tpu.core_type = #tpu.core_type<tc>, window_params = [{transform_indices = @transform_0, window_bounds = array<i64: 256, 64>}, {pipeline_mode = #tpu.pipeline_mode<synchronous>, transform_indices = @transform_1, window_bounds = array<i64: 64, 80>}, {pipeline_mode = #tpu.pipeline_mode<synchronous>, transform_indices = @transform_2, window_bounds = array<i64: 1, 80>}, {transform_indices = @transform_3, window_bounds = array<i64: 256, 8>}, {transform_indices = @transform_4, window_bounds = array<i64: 256, 8>}, {transform_indices = @transform_5, window_bounds = array<i64: 256, 64>}]} {
    %c0 = arith.constant 0 : index
    %c0_0 = arith.constant 0 : index
    %0 = vector.load %arg1[%c0, %c0_0] : memref<256x64xbf16, #tpu.memory_space<vmem>>, vector<256x64xbf16>
    %c0_1 = arith.constant 0 : index
    %c0_2 = arith.constant 0 : index
    %1 = vector.load %arg2[%c0_1, %c0_2] : memref<64x80xbf16, #tpu.memory_space<vmem>>, vector<64x80xbf16>
    %cst = arith.constant dense<0.000000e+00> : vector<256x80xf32>
    %2 = tpu.matmul %0, %1, %cst {dimension_numbers = #tpu.dot_dimension_numbers<[1], [0], [0], [1], [0, 0, 1, 1], [], []>} : vector<256x64xbf16>, vector<64x80xbf16>, vector<256x80xf32> -> vector<256x80xf32>
    %c0_3 = arith.constant 0 : index
    %c0_4 = arith.constant 0 : index
    %3 = vector.load %arg3[%c0_3, %c0_4] : memref<1x80xf32, #tpu.memory_space<vmem>>, vector<1x80xf32>
    %4 = vector.broadcast %3 : vector<1x80xf32> to vector<256x80xf32>
    %5 = arith.addf %2, %4 : vector<256x80xf32>
    %6 = vector.extract_strided_slice %5 {offsets = [0, 0], sizes = [256, 8], strides = [1, 1]} : vector<256x80xf32> to vector<256x8xf32>
    %7 = arith.truncf %6 : vector<256x8xf32> to vector<256x8xbf16>
    %c0_5 = arith.constant 0 : index
    %c0_6 = arith.constant 0 : index
    %8 = vector.load %arg4[%c0_5, %c0_6] : memref<256x8xbf16, #tpu.memory_space<vmem>>, vector<256x8xbf16>
    tpu.vector_store %arg4[%c0_5, %c0_6], %7 {strides = array<i32>} : memref<256x8xbf16, #tpu.memory_space<vmem>>, vector<256x8xbf16>,
    %9 = vector.extract_strided_slice %5 {offsets = [0, 8], sizes = [256, 8], strides = [1, 1]} : vector<256x80xf32> to vector<256x8xf32>
    %10 = arith.truncf %9 : vector<256x8xf32> to vector<256x8xbf16>
    %c0_7 = arith.constant 0 : index
    %c0_8 = arith.constant 0 : index
    %11 = vector.load %arg5[%c0_7, %c0_8] : memref<256x8xbf16, #tpu.memory_space<vmem>>, vector<256x8xbf16>
    tpu.vector_store %arg5[%c0_7, %c0_8], %10 {strides = array<i32>} : memref<256x8xbf16, #tpu.memory_space<vmem>>, vector<256x8xbf16>,
    %12 = vector.extract_strided_slice %5 {offsets = [0, 16], sizes = [256, 64], strides = [1, 1]} : vector<256x80xf32> to vector<256x64xf32>
    %13 = arith.truncf %12 : vector<256x64xf32> to vector<256x64xbf16>
    %c0_9 = arith.constant 0 : index
    %c0_10 = arith.constant 0 : index
    %14 = vector.load %arg6[%c0_9, %c0_10] : memref<256x64xbf16, #tpu.memory_space<vmem>>, vector<256x64xbf16>
    tpu.vector_store %arg6[%c0_9, %c0_10], %13 {strides = array<i32>} : memref<256x64xbf16, #tpu.memory_space<vmem>>, vector<256x64xbf16>,
    return
  }
  func.func @transform_0(%arg0: i32) -> (i32, i32) {
    %c0_i32 = arith.constant 0 : i32
    %c0_i32_0 = arith.constant 0 : i32
    return %arg0, %c0_i32 : i32, i32
  }
  func.func @transform_1(%arg0: i32) -> (i32, i32) {
    %c0_i32 = arith.constant 0 : i32
    %c0_i32_0 = arith.constant 0 : i32
    %c0_i32_1 = arith.constant 0 : i32
    return %c0_i32, %c0_i32_0 : i32, i32
  }
  func.func @transform_2(%arg0: i32) -> (i32, i32) {
    %c0_i32 = arith.constant 0 : i32
    %c0_i32_0 = arith.constant 0 : i32
    %c0_i32_1 = arith.constant 0 : i32
    return %c0_i32, %c0_i32_0 : i32, i32
  }
  func.func @transform_3(%arg0: i32) -> (i32, i32) {
    %c0_i32 = arith.constant 0 : i32
    %c0_i32_0 = arith.constant 0 : i32
    return %arg0, %c0_i32 : i32, i32
  }
  func.func @transform_4(%arg0: i32) -> (i32, i32) {
    %c0_i32 = arith.constant 0 : i32
    %c0_i32_0 = arith.constant 0 : i32
    return %arg0, %c0_i32 : i32, i32
  }
  func.func @transform_5(%arg0: i32) -> (i32, i32) {
    %c0_i32 = arith.constant 0 : i32
    %c0_i32_0 = arith.constant 0 : i32
    return %arg0, %c0_i32 : i32, i32
  }
}

module attributes {stable_mosaic.version = 11 : i64} {
  func.func @_attention_kernel(%arg0: i32, %arg1: i32, %arg2: memref<1x256x8xbf16, #tpu.memory_space<vmem>>, %arg3: memref<1x256x8xbf16, #tpu.memory_space<vmem>>, %arg4: memref<1x256x64xbf16, #tpu.memory_space<vmem>>, %arg5: memref<1x256x64xf32, #tpu.memory_space<vmem>>, %arg6: memref<1x256x64xf32, #tpu.memory_space<vmem>>) attributes {dimension_semantics = [#tpu.dimension_semantics<parallel>, #tpu.dimension_semantics<parallel>], iteration_bounds = array<i64: 2, 1>, scalar_prefetch = 0 : i64, scratch_operands = 0 : i64, tpu.core_type = #tpu.core_type<tc>, window_params = [{transform_indices = @transform_0, window_bounds = array<i64: 1, 256, 8>}, {transform_indices = @transform_1, window_bounds = array<i64: 1, 256, 8>}, {transform_indices = @transform_2, window_bounds = array<i64: 1, 256, 64>}, {transform_indices = @transform_3, window_bounds = array<i64: 1, 256, 64>}, {transform_indices = @transform_4, window_bounds = array<i64: 1, 256, 64>}]} {
    %c0 = arith.constant 0 : index
    %c0_0 = arith.constant 0 : index
    %c0_1 = arith.constant 0 : index
    %0 = vector.load %arg2[%c0, %c0_0, %c0_1] : memref<1x256x8xbf16, #tpu.memory_space<vmem>>, vector<1x256x8xbf16>
    %1 = vector.shape_cast %0 : vector<1x256x8xbf16> to vector<256x8xbf16>
    %c0_2 = arith.constant 0 : index
    %c0_3 = arith.constant 0 : index
    %c0_4 = arith.constant 0 : index
    %2 = vector.load %arg3[%c0_2, %c0_3, %c0_4] : memref<1x256x8xbf16, #tpu.memory_space<vmem>>, vector<1x256x8xbf16>
    %3 = vector.shape_cast %2 : vector<1x256x8xbf16> to vector<256x8xbf16>
    %c0_5 = arith.constant 0 : index
    %c0_6 = arith.constant 0 : index
    %c0_7 = arith.constant 0 : index
    %4 = vector.load %arg4[%c0_5, %c0_6, %c0_7] : memref<1x256x64xbf16, #tpu.memory_space<vmem>>, vector<1x256x64xbf16>
    %5 = vector.shape_cast %4 : vector<1x256x64xbf16> to vector<256x64xbf16>
    %cst = arith.constant dense<0.000000e+00> : vector<256x256xf32>
    %6 = tpu.matmul %1, %3, %cst {dimension_numbers = #tpu.dot_dimension_numbers<[1], [1], [0], [0], [0, 0, 1, 0], [], []>} : vector<256x8xbf16>, vector<256x8xbf16>, vector<256x256xf32> -> vector<256x256xf32>
    %cst_8 = arith.constant 1.250000e-01 : f32
    %7 = vector.broadcast %cst_8 : f32 to vector<256x256xf32>
    %8 = arith.mulf %6, %7 : vector<256x256xf32>
    %cst_9 = arith.constant dense<0xFF800000> : vector<256xf32>
    %9 = vector.multi_reduction <maximumf>, %8, %cst_9 [1] : vector<256x256xf32> to vector<256xf32>
    %10 = vector.shape_cast %9 : vector<256xf32> to vector<256x1xf32>
    %11 = vector.broadcast %10 : vector<256x1xf32> to vector<256x256xf32>
    %12 = arith.subf %8, %11 : vector<256x256xf32>
    %13 = math.exp %12 : vector<256x256xf32>
    %cst_10 = arith.constant dense<0.000000e+00> : vector<256xf32>
    %14 = vector.multi_reduction <add>, %13, %cst_10 [1] : vector<256x256xf32> to vector<256xf32>
    %15 = vector.shape_cast %14 : vector<256xf32> to vector<256x1xf32>
    %16 = tpu.reciprocal %15 {approx = true} : vector<256x1xf32> -> vector<256x1xf32>
    %17 = vector.broadcast %16 : vector<256x1xf32> to vector<256x256xf32>
    %18 = arith.mulf %13, %17 : vector<256x256xf32>
    %19 = arith.truncf %18 : vector<256x256xf32> to vector<256x256xbf16>
    %cst_11 = arith.constant dense<0.000000e+00> : vector<256x64xf32>
    %20 = tpu.matmul %19, %5, %cst_11 {dimension_numbers = #tpu.dot_dimension_numbers<[1], [0], [0], [1], [0, 0, 1, 1], [], []>} : vector<256x256xbf16>, vector<256x64xbf16>, vector<256x64xf32> -> vector<256x64xf32>
    %c0_12 = arith.constant 0 : index
    %c0_13 = arith.constant 0 : index
    %c0_14 = arith.constant 0 : index
    %21 = vector.load %arg5[%c0_12, %c0_13, %c0_14] : memref<1x256x64xf32, #tpu.memory_space<vmem>>, vector<1x256x64xf32>
    %22 = vector.shape_cast %21 : vector<1x256x64xf32> to vector<256x64xf32>
    %23 = arith.addf %20, %22 : vector<256x64xf32>
    %c0_15 = arith.constant 0 : index
    %c0_16 = arith.constant 0 : index
    %c0_17 = arith.constant 0 : index
    %24 = vector.load %arg6[%c0_15, %c0_16, %c0_17] : memref<1x256x64xf32, #tpu.memory_space<vmem>>, vector<1x256x64xf32>
    %25 = vector.shape_cast %24 : vector<1x256x64xf32> to vector<256x64xf32>
    %26 = vector.shape_cast %23 : vector<256x64xf32> to vector<1x256x64xf32>
    tpu.vector_store %arg6[%c0_15, %c0_16, %c0_17], %26 {strides = array<i32>} : memref<1x256x64xf32, #tpu.memory_space<vmem>>, vector<1x256x64xf32>,
    return
  }
  func.func @transform_0(%arg0: i32, %arg1: i32) -> (i32, i32, i32) {
    %c0_i32 = arith.constant 0 : i32
    %c0_i32_0 = arith.constant 0 : i32
    return %arg0, %arg1, %c0_i32 : i32, i32, i32
  }
  func.func @transform_1(%arg0: i32, %arg1: i32) -> (i32, i32, i32) {
    %c0_i32 = arith.constant 0 : i32
    %c0_i32_0 = arith.constant 0 : i32
    %c0_i32_1 = arith.constant 0 : i32
    return %arg0, %c0_i32, %c0_i32_0 : i32, i32, i32
  }
  func.func @transform_2(%arg0: i32, %arg1: i32) -> (i32, i32, i32) {
    %c0_i32 = arith.constant 0 : i32
    %c0_i32_0 = arith.constant 0 : i32
    %c0_i32_1 = arith.constant 0 : i32
    return %arg0, %c0_i32, %c0_i32_0 : i32, i32, i32
  }
  func.func @transform_3(%arg0: i32, %arg1: i32) -> (i32, i32, i32) {
    %c0_i32 = arith.constant 0 : i32
    %c0_i32_0 = arith.constant 0 : i32
    return %arg0, %arg1, %c0_i32 : i32, i32, i32
  }
  func.func @transform_4(%arg0: i32, %arg1: i32) -> (i32, i32, i32) {
    %c0_i32 = arith.constant 0 : i32
    %c0_i32_0 = arith.constant 0 : i32
    return %arg0, %arg1, %c0_i32 : i32, i32, i32
  }
}

</mosaic_0001>

<bundles_post_ra>
// kernel: self_attention_forward.2
= control target key start
LH: loop header
LB: loop body
LE: loop exit
PB: predicated region body
PF: predicated region fallthrough
CT: control target
= control target key end

     0   :  { %s1413_s18 = smov 0   ;;  %s1917_s0 = inlined_call_operand.vmem [shape: bf16[512,64], index: 0, kind: input, shape index: {}]   ;;  %s1918_s1 = inlined_call_operand.vmem [shape: bf16[64,80], index: 1, kind: input, shape index: {}]   ;;  %s1919_s2 = inlined_call_operand.vmem [shape: f32[1,80], index: 2, kind: input, shape index: {}]   ;;  %s1920_s3 = inlined_call_operand.vmem [shape: bf16[512,8], index: 3, kind: output, shape index: {0}]   ;;  %s1921_s4 = inlined_call_operand.vmem [shape: bf16[512,8], index: 4, kind: output, shape index: {1}]   ;;  %s1922_s5 = inlined_call_operand.vmem [shape: bf16[512,64], index: 5, kind: output, shape index: {2}]  }
   0x1 LB: > { %s1159_s19 = sadd.s32 4294967295, %s1379_s18   ;;  %p1163_p0 = scmp.ge.s32.totalorder %s1379_s18, 1  ;;  %s1379_s18 = sphi %s1413_s18, %s16_s18  }
   0x2   : > { %p193_p1 = scmp.lt.s32.totalorder %s1379_s18, 3 }
   0x4   : > { %p194_p2 = pnand %p1163_p0, %p193_p1 }
   0x5   : > { %s1164_s22 = sshll.u32 (!%p194_p2), %s1159_s19, 5  ;;  %s1381_s13 = smov (!%p194_p2), 120  }
   0x6   : > { %197 = sbr.rel (%p194_p2) target bundleno = 466 (0x1d2), region = 32  ;;  %p232_p3 = scmp.lt.s32.totalorder (!%p194_p2), %s1164_s22, 63 }
   0x7   : > { %s1382_s14 = smov (!%p194_p2), 112  }
   0xb   : > { %v1353_v0 = vld [vmem:[%s1918_s1 + $0x18] sm:$0xff]   ;;  %v1354_v1 = vld [vmem:[%s1918_s1 + $0x10] sm:$0xff]   ;;  %s1924_s22 = smov (!%p232_p3, %s1164_s22), 63  ;;  %v1355_v2 = vld [vmem:[%s1918_s1 + $0x8] sm:$0xff]   ;;  %vm407_vm0 = vcmask 523264   ;;  %vm745_vm1 = vcmask 60416  }
   0xc   : > { %1295 = vmatprep.subr.bf16.mxu0 %v1353_v0  ;;  %1335 = vmatprep.subr.bf16.mxu1 %v1353_v0  ;;  %s1430_s27 = sshll.u32 %s1924_s22, 2  ;;  %v1356_v3 = vld [vmem:[%s1918_s1] sm:$0xff]   ;;  %vm1002_vm2 = vcmask 519168  }
   0xd   : > { %1296 = vmatpush3.bf16.msra.mxu0 %v1353_v0  ;;  %1339 = vmatpush3.bf16.msra.mxu1 %v1353_v0  ;;  %s1439_s7 = scalar_lea.vmem %s1917_s0, %s1430_s27  ;;  %v1476_v20 = vld [vmem:[%s1919_s2] ss:$0 sm:$0xff]  ;;  %s1484_s12 = scalar_lea.vmem %s1920_s3, %s1430_s27 }
   0xe   : > { %1297 = vmatprep.subr.bf16.mxu0 %v1354_v1  ;;  %1336 = vmatprep.subr.bf16.mxu1 %v1354_v1  ;;  %v1357_v4 = vld [vmem:[%s1439_s7] sm:$0xff]   ;;  %v1359_v6 = vld [vmem:[%s1439_s7 + $0x8] sm:$0xff]   ;;  %v1361_v8 = vld [vmem:[%s1439_s7 + $0x10] sm:$0xff]   ;;  %s1767_s17 = scalar_lea.vmem %s1921_s4, %s1430_s27  ;;  %s1780_s21 = scalar_lea.vmem %s1922_s5, %s1430_s27 }
   0xf   : > { %v1358_v5 = vld [vmem:[%s1439_s7 + $0x40] sm:$0xff]   ;;  %1303 = vmatprep.mubr.msk.bf16.mxu0 %vm407_vm0, %v1357_v4  ;;  %v1360_v7 = vld [vmem:[%s1439_s7 + $0x48] sm:$0xff]   ;;  %v1363_v9 = vld [vmem:[%s1439_s7 + $0x50] sm:$0xff]  }
  0x10   : > { %1319 = vmatprep.mubr.msk.bf16.mxu1 %vm407_vm0, %v1358_v5  ;;  %v1362_v10 = vld [vmem:[%s1439_s7 + $0x18] sm:$0xff]   ;;  %v1365_v12 = vld [vmem:[%s1439_s7 + $0x20] sm:$0xff]   ;;  %v1366_v14 = vld [vmem:[%s1439_s7 + $0x28] sm:$0xff]  }
  0x11   : > { %1298 = vmatpush3.bf16.msra.mxu0 %v1354_v1  ;;  %1340 = vmatpush3.bf16.msra.mxu1 %v1354_v1  ;;  %v1364_v11 = vld [vmem:[%s1439_s7 + $0x58] sm:$0xff]   ;;  %v1367_v13 = vld [vmem:[%s1439_s7 + $0x60] sm:$0xff]   ;;  %v1368_v15 = vld [vmem:[%s1439_s7 + $0x68] sm:$0xff]  }
  0x12   : > { %1299 = vmatprep.subr.bf16.mxu0 %v1355_v2  ;;  %1337 = vmatprep.subr.bf16.mxu1 %v1355_v2  ;;  %v1369_v16 = vld [vmem:[%s1439_s7 + $0x30] sm:$0xff]   ;;  %v1370_v18 = vld [vmem:[%s1439_s7 + $0x38] sm:$0xff]  }
  0x13   : > { %v1371_v17 = vld [vmem:[%s1439_s7 + $0x70] sm:$0xff]   ;;  %v1372_v19 = vld [vmem:[%s1439_s7 + $0x78] sm:$0xff]  }
  0x15   : > { %1300 = vmatpush3.bf16.msra.mxu0 %v1355_v2  ;;  %1341 = vmatpush3.bf16.msra.mxu1 %v1355_v2 }
  0x16   : > { %1301 = vmatprep.subr.bf16.mxu0 %v1356_v3  ;;  %1338 = vmatprep.subr.bf16.mxu1 %v1356_v3 }
  0x19   : > { %1302 = vmatpush3.bf16.msra.mxu0 %v1356_v3  ;;  %1342 = vmatpush3.bf16.msra.mxu1 %v1356_v3 }
  0x1c   : > { %1304 = vmatmul.mubr.msk.bf16.vlgmr.msra.gmra.mxu0 %vm407_vm0, %v1359_v6  ;;  %1320 = vmatmul.mubr.msk.bf16.vlgmr.msra.gmra.mxu1 %vm407_vm0, %v1360_v7 }
  0x1d   : > { %1307 = vmatprep.mubr.msk.bf16.mxu0 %vm407_vm0, %v1361_v8  ;;  %1323 = vmatprep.mubr.msk.bf16.mxu1 %vm407_vm0, %v1363_v9 }
  0x24   : > { %1308 = vmatmul.mubr.msk.bf16.gmra.mxu0 %vm407_vm0, %v1362_v10  ;;  %1324 = vmatmul.mubr.msk.bf16.gmra.mxu1 %vm407_vm0, %v1364_v11 }
  0x25   : > { %1311 = vmatprep.mubr.msk.bf16.mxu0 %vm407_vm0, %v1365_v12  ;;  %1327 = vmatprep.mubr.msk.bf16.mxu1 %vm407_vm0, %v1367_v13 }
  0x2c   : > { %1312 = vmatmul.mubr.msk.bf16.gmra.mxu0 %vm407_vm0, %v1366_v14  ;;  %1328 = vmatmul.mubr.msk.bf16.gmra.mxu1 %vm407_vm0, %v1368_v15 }
  0x2d   : > { %1315 = vmatprep.mubr.msk.bf16.mxu0 %vm407_vm0, %v1369_v16  ;;  %1331 = vmatprep.mubr.msk.bf16.mxu1 %vm407_vm0, %v1371_v17 }
  0x34   : > { %1316 = vmatmul.mubr.msk.bf16.gmra.mxu0 %vm407_vm0, %v1370_v18  ;;  %1332 = vmatmul.mubr.msk.bf16.gmra.mxu1 %vm407_vm0, %v1372_v19 }
  0xdc   : > { %v1305_v21 = vpop.f32.mrf.mxu0  ;;  %v1321_v22 = vpop.f32.mrf.mxu1 }
  0xdd   : > { %v499_v23 = vadd.f32 %v1305_v21, %v1476_v20  ;;  %v563_v24 = vadd.f32 %v1321_v22, %v1476_v20 }
  0xde   : > { %v490_v25 = vpop.f32.mrf.mxu0  ;;  %v554_v26 = vpop.f32.mrf.mxu1 }
  0xdf   : > { %v1245_v27 = vpack.c.bf16 %v499_v23, %v499_v23  ;;  %v1261_v28 = vpack.c.bf16 %v563_v24, %v563_v24  ;;  %v491_v29 = vadd.f32 %v1476_v20, %v490_v25  ;;  %v555_v30 = vadd.f32 %v1476_v20, %v554_v26 }
  0xe0   : > { %v1306_v31 = vpop.f32.mrf.mxu0  ;;  %v1322_v32 = vpop.f32.mrf.mxu1 }
  0xe1   : > { %748 = vst.msk [vmem:[%s1484_s12 + $0x8] sm:$0xf] %vm745_vm1, %v1245_v27  ;;  %764 = vst.msk [vmem:[%s1484_s12 + $0x48] sm:$0xf] %vm745_vm1, %v1261_v28  ;;  %v1492_v33 = vpack.c.bf16 %v491_v29, %v491_v29  ;;  %v1494_v34 = vpack.c.bf16 %v555_v30, %v555_v30  ;;  %v502_v35 = vadd.f32 %v1306_v31, %v1476_v20  ;;  %814 = vrot.lane.b32.xlu0 %v1261_v28, %s1381_s13 }
  0xe2   : > { %v566_v36 = vadd.f32 %v1322_v32, %v1476_v20  ;;  %782 = vrot.lane.b32.xlu1 %v1245_v27, %s1381_s13  ;;  %v493_v37 = vpop.f32.mrf.mxu0  ;;  %v557_v38 = vpop.f32.mrf.mxu1 }
  0xe3   : > { %746 = vst.msk [vmem:[%s1484_s12] sm:$0xf] %vm745_vm1, %v1492_v33  ;;  %762 = vst.msk [vmem:[%s1484_s12 + $0x40] sm:$0xf] %vm745_vm1, %v1494_v34  ;;  %v1246_v39 = vpack.c.bf16 %v502_v35, %v502_v35  ;;  %v494_v41 = vadd.f32 %v1476_v20, %v493_v37  ;;  %v558_v42 = vadd.f32 %v1476_v20, %v557_v38 }
  0xe4   : > { %v1506_v40 = vpack.c.bf16 %v566_v36, %v566_v36  ;;  %v1309_v43 = vpop.f32.mrf.mxu0  ;;  %v1325_v44 = vpop.f32.mrf.mxu1 }
  0xe5   : > { %749 = vst.msk [vmem:[%s1484_s12 + $0xc] sm:$0xf] %vm745_vm1, %v1246_v39  ;;  %v1515_v45 = vpack.c.bf16 %v494_v41, %v494_v41  ;;  %v1517_v46 = vpack.c.bf16 %v558_v42, %v558_v42  ;;  %910 = vrot.lane.b32.xlu0 %v1245_v27, %s1382_s14  ;;  %v515_v47 = vadd.f32 %v1309_v43, %v1476_v20 }
  0xe6   : > { %765 = vst.msk [vmem:[%s1484_s12 + $0x4c] sm:$0xf] %vm745_vm1, %v1506_v40  ;;  %v579_v48 = vadd.f32 %v1325_v44, %v1476_v20  ;;  %784 = vrot.lane.b32.xlu1 %v1246_v39, %s1381_s13  ;;  %v506_v49 = vpop.f32.mrf.mxu0  ;;  %v570_v50 = vpop.f32.mrf.mxu1 }
  0xe7   : > { %747 = vst.msk [vmem:[%s1484_s12 + $0x4] sm:$0xf] %vm745_vm1, %v1515_v45  ;;  %763 = vst.msk [vmem:[%s1484_s12 + $0x44] sm:$0xf] %vm745_vm1, %v1517_v46  ;;  %v1529_v51 = vpack.c.bf16 %v515_v47, %v515_v47  ;;  %v507_v52 = vadd.f32 %v1476_v20, %v506_v49  ;;  %v571_v54 = vadd.f32 %v1476_v20, %v570_v50 }
  0xe8   : > { %v1532_v53 = vpack.c.bf16 %v579_v48, %v579_v48  ;;  %v1310_v55 = vpop.f32.mrf.mxu0  ;;  %v1326_v56 = vpop.f32.mrf.mxu1 }
  0xe9   : > { %942 = vrot.lane.b32.xlu0 %v1261_v28, %s1382_s14  ;;  %752 = vst.msk [vmem:[%s1484_s12 + $0x18] sm:$0xf] %vm745_vm1, %v1529_v51  ;;  %v1539_v57 = vpack.c.bf16 %v507_v52, %v507_v52  ;;  %v518_v58 = vadd.f32 %v1310_v55, %v1476_v20  ;;  %v1545_v59 = vpack.c.bf16 %v571_v54, %v571_v54 }
  0xea   : > { %768 = vst.msk [vmem:[%s1484_s12 + $0x58] sm:$0xf] %vm745_vm1, %v1532_v53  ;;  %v582_v60 = vadd.f32 %v1326_v56, %v1476_v20  ;;  %816 = vrot.lane.b32.xlu1 %v1506_v40, %s1381_s13  ;;  %v509_v61 = vpop.f32.mrf.mxu0  ;;  %v573_v62 = vpop.f32.mrf.mxu1 }
  0xeb   : > { %750 = vst.msk [vmem:[%s1484_s12 + $0x10] sm:$0xf] %vm745_vm1, %v1539_v57  ;;  %v1553_v63 = vpack.c.bf16 %v518_v58, %v518_v58  ;;  %v510_v0 = vadd.f32 %v1476_v20, %v509_v61  ;;  %766 = vst.msk [vmem:[%s1484_s12 + $0x50] sm:$0xf] %vm745_vm1, %v1545_v59  ;;  %v574_v2 = vadd.f32 %v1476_v20, %v573_v62 }
  0xec   : > { %v1559_v1 = vpack.c.bf16 %v582_v60, %v582_v60  ;;  %v1313_v3 = vpop.f32.mrf.mxu0  ;;  %v1329_v4 = vpop.f32.mrf.mxu1 }
  0xed   : > { %778 = vrot.lane.b32.xlu0 %v1492_v33, %s1381_s13  ;;  %753 = vst.msk [vmem:[%s1484_s12 + $0x1c] sm:$0xf] %vm745_vm1, %v1553_v63  ;;  %v1567_v5 = vpack.c.bf16 %v510_v0, %v510_v0  ;;  %v1572_v6 = vpack.c.bf16 %v574_v2, %v574_v2  ;;  %v531_v7 = vadd.f32 %v1313_v3, %v1476_v20 }
  0xee   : > { %769 = vst.msk [vmem:[%s1484_s12 + $0x5c] sm:$0xf] %vm745_vm1, %v1559_v1  ;;  %v595_v8 = vadd.f32 %v1329_v4, %v1476_v20  ;;  %912 = vrot.lane.b32.xlu1 %v1246_v39, %s1382_s14  ;;  %v522_v9 = vpop.f32.mrf.mxu0  ;;  %v586_v10 = vpop.f32.mrf.mxu1 }
  0xef   : > { %751 = vst.msk [vmem:[%s1484_s12 + $0x14] sm:$0xf] %vm745_vm1, %v1567_v5  ;;  %767 = vst.msk [vmem:[%s1484_s12 + $0x54] sm:$0xf] %vm745_vm1, %v1572_v6  ;;  %v1583_v11 = vpack.c.bf16 %v531_v7, %v531_v7  ;;  %v523_v12 = vadd.f32 %v1476_v20, %v522_v9  ;;  %v587_v14 = vadd.f32 %v1476_v20, %v586_v10 }
  0xf0   : > { %v1586_v13 = vpack.c.bf16 %v595_v8, %v595_v8  ;;  %v1314_v15 = vpop.f32.mrf.mxu0  ;;  %v1330_v16 = vpop.f32.mrf.mxu1 }
  0xf1   : > { %810 = vrot.lane.b32.xlu0 %v1494_v34, %s1381_s13  ;;  %756 = vst.msk [vmem:[%s1484_s12 + $0x28] sm:$0xf] %vm745_vm1, %v1583_v11  ;;  %v1594_v17 = vpack.c.bf16 %v523_v12, %v523_v12  ;;  %v534_v18 = vadd.f32 %v1314_v15, %v1476_v20  ;;  %v1600_v19 = vpack.c.bf16 %v587_v14, %v587_v14 }
  0xf2   : > { %772 = vst.msk [vmem:[%s1484_s12 + $0x68] sm:$0xf] %vm745_vm1, %v1586_v13  ;;  %v598_v21 = vadd.f32 %v1330_v16, %v1476_v20  ;;  %944 = vrot.lane.b32.xlu1 %v1506_v40, %s1382_s14  ;;  %v525_v22 = vpop.f32.mrf.mxu0  ;;  %v589_v23 = vpop.f32.mrf.mxu1 }
  0xf3   : > { %754 = vst.msk [vmem:[%s1484_s12 + $0x20] sm:$0xf] %vm745_vm1, %v1594_v17  ;;  %v1608_v24 = vpack.c.bf16 %v534_v18, %v534_v18  ;;  %v526_v25 = vadd.f32 %v1476_v20, %v525_v22  ;;  %770 = vst.msk [vmem:[%s1484_s12 + $0x60] sm:$0xf] %vm745_vm1, %v1600_v19  ;;  %v590_v27 = vadd.f32 %v1476_v20, %v589_v23 }
  0xf4   : > { %v1614_v26 = vpack.c.bf16 %v598_v21, %v598_v21  ;;  %v1317_v28 = vpop.f32.mrf.mxu0  ;;  %v1333_v29 = vpop.f32.mrf.mxu1 }
  0xf5   : > { %906 = vrot.lane.b32.xlu0 %v1492_v33, %s1382_s14  ;;  %757 = vst.msk [vmem:[%s1484_s12 + $0x2c] sm:$0xf] %vm745_vm1, %v1608_v24  ;;  %v1622_v30 = vpack.c.bf16 %v526_v25, %v526_v25  ;;  %v1627_v31 = vpack.c.bf16 %v590_v27, %v590_v27  ;;  %v547_v32 = vadd.f32 %v1317_v28, %v1476_v20 }
  0xf6   : > { %773 = vst.msk [vmem:[%s1484_s12 + $0x6c] sm:$0xf] %vm745_vm1, %v1614_v26  ;;  %v611_v35 = vadd.f32 %v1333_v29, %v1476_v20  ;;  %812 = vrot.lane.b32.xlu1 %v1517_v46, %s1381_s13  ;;  %v538_v33 = vpop.f32.mrf.mxu0  ;;  %v602_v36 = vpop.f32.mrf.mxu1 }
  0xf7   : > { %755 = vst.msk [vmem:[%s1484_s12 + $0x24] sm:$0xf] %vm745_vm1, %v1622_v30  ;;  %771 = vst.msk [vmem:[%s1484_s12 + $0x64] sm:$0xf] %vm745_vm1, %v1627_v31  ;;  %v1639_v37 = vpack.c.bf16 %v547_v32, %v547_v32  ;;  %v539_v38 = vadd.f32 %v1476_v20, %v538_v33  ;;  %v603_v40 = vadd.f32 %v1476_v20, %v602_v36 }
  0xf8   : > { %v1642_v39 = vpack.c.bf16 %v611_v35, %v611_v35  ;;  %v1318_v41 = vpop.f32.mrf.mxu0  ;;  %v1334_v42 = vpop.f32.mrf.mxu1 }
  0xf9   : > { %938 = vrot.lane.b32.xlu0 %v1494_v34, %s1382_s14  ;;  %760 = vst.msk [vmem:[%s1484_s12 + $0x38] sm:$0xf] %vm745_vm1, %v1639_v37  ;;  %v1650_v43 = vpack.c.bf16 %v539_v38, %v539_v38  ;;  %v550_v44 = vadd.f32 %v1318_v41, %v1476_v20  ;;  %v1656_v47 = vpack.c.bf16 %v603_v40, %v603_v40 }
  0xfa   : > { %776 = vst.msk [vmem:[%s1484_s12 + $0x78] sm:$0xf] %vm745_vm1, %v1642_v39  ;;  %v614_v48 = vadd.f32 %v1334_v42, %v1476_v20  ;;  %908 = vrot.lane.b32.xlu1 %v1515_v45, %s1382_s14  ;;  %v541_v34 = vpop.f32.mrf.mxu0  ;;  %v605_v49 = vpop.f32.mrf.mxu1 }
  0xfb   : > { %758 = vst.msk [vmem:[%s1484_s12 + $0x30] sm:$0xf] %vm745_vm1, %v1650_v43  ;;  %v1258_v50 = vpack.c.bf16 %v550_v44, %v550_v44  ;;  %v542_v52 = vadd.f32 %v1476_v20, %v541_v34  ;;  %774 = vst.msk [vmem:[%s1484_s12 + $0x70] sm:$0xf] %vm745_vm1, %v1656_v47  ;;  %v606_v55 = vadd.f32 %v1476_v20, %v605_v49 }
  0xfc   : > { %v1668_v54 = vpack.c.bf16 %v614_v48, %v614_v48 }
  0xfd   : > { %780 = vrot.lane.b32.xlu0 %v1515_v45, %s1381_s13  ;;  %761 = vst.msk [vmem:[%s1484_s12 + $0x3c] sm:$0xf] %vm745_vm1, %v1258_v50  ;;  %v1256_v56 = vpack.c.bf16 %v542_v52, %v542_v52  ;;  %v1272_v58 = vpack.c.bf16 %v606_v55, %v606_v55 }
  0xfe   : > { %777 = vst.msk [vmem:[%s1484_s12 + $0x7c] sm:$0xf] %vm745_vm1, %v1668_v54  ;;  %940 = vrot.lane.b32.xlu1 %v1517_v46, %s1382_s14 }
  0xff   : > { %759 = vst.msk [vmem:[%s1484_s12 + $0x34] sm:$0xf] %vm745_vm1, %v1256_v56  ;;  %775 = vst.msk [vmem:[%s1484_s12 + $0x74] sm:$0xf] %vm745_vm1, %v1272_v58 }
 0x101   : > { %790 = vrot.lane.b32.xlu0 %v1529_v51, %s1381_s13 }
 0x102   : > { %792 = vrot.lane.b32.xlu1 %v1553_v63, %s1381_s13 }
 0x105   : > { %822 = vrot.lane.b32.xlu0 %v1532_v53, %s1381_s13 }
 0x106   : > { %824 = vrot.lane.b32.xlu1 %v1559_v1, %s1381_s13 }
 0x109   : > { %918 = vrot.lane.b32.xlu0 %v1529_v51, %s1382_s14 }
 0x10a   : > { %920 = vrot.lane.b32.xlu1 %v1553_v63, %s1382_s14 }
 0x10d   : > { %950 = vrot.lane.b32.xlu0 %v1532_v53, %s1382_s14 }
 0x10e   : > { %952 = vrot.lane.b32.xlu1 %v1559_v1, %s1382_s14 }
 0x111   : > { %786 = vrot.lane.b32.xlu0 %v1539_v57, %s1381_s13 }
 0x112   : > { %788 = vrot.lane.b32.xlu1 %v1567_v5, %s1381_s13 }
 0x115   : > { %818 = vrot.lane.b32.xlu0 %v1545_v59, %s1381_s13 }
 0x116   : > { %820 = vrot.lane.b32.xlu1 %v1572_v6, %s1381_s13 }
 0x119   : > { %914 = vrot.lane.b32.xlu0 %v1539_v57, %s1382_s14 }
 0x11a   : > { %916 = vrot.lane.b32.xlu1 %v1567_v5, %s1382_s14 }
 0x11d   : > { %946 = vrot.lane.b32.xlu0 %v1545_v59, %s1382_s14 }
 0x11e   : > { %948 = vrot.lane.b32.xlu1 %v1572_v6, %s1382_s14 }
 0x121   : > { %798 = vrot.lane.b32.xlu0 %v1583_v11, %s1381_s13 }
 0x122   : > { %800 = vrot.lane.b32.xlu1 %v1608_v24, %s1381_s13 }
 0x125   : > { %830 = vrot.lane.b32.xlu0 %v1586_v13, %s1381_s13 }
 0x126   : > { %832 = vrot.lane.b32.xlu1 %v1614_v26, %s1381_s13 }
 0x129   : > { %926 = vrot.lane.b32.xlu0 %v1583_v11, %s1382_s14 }
 0x12a   : > { %928 = vrot.lane.b32.xlu1 %v1608_v24, %s1382_s14 }
 0x12d   : > { %958 = vrot.lane.b32.xlu0 %v1586_v13, %s1382_s14 }
 0x12e   : > { %960 = vrot.lane.b32.xlu1 %v1614_v26, %s1382_s14 }
 0x131   : > { %794 = vrot.lane.b32.xlu0 %v1594_v17, %s1381_s13 }
 0x132   : > { %796 = vrot.lane.b32.xlu1 %v1622_v30, %s1381_s13 }
 0x135   : > { %826 = vrot.lane.b32.xlu0 %v1600_v19, %s1381_s13 }
 0x136   : > { %828 = vrot.lane.b32.xlu1 %v1627_v31, %s1381_s13 }
 0x139   : > { %922 = vrot.lane.b32.xlu0 %v1594_v17, %s1382_s14 }
 0x13a   : > { %924 = vrot.lane.b32.xlu1 %v1622_v30, %s1382_s14 }
 0x13d   : > { %954 = vrot.lane.b32.xlu0 %v1600_v19, %s1382_s14 }
 0x13e   : > { %956 = vrot.lane.b32.xlu1 %v1627_v31, %s1382_s14 }
 0x141   : > { %806 = vrot.lane.b32.xlu0 %v1639_v37, %s1381_s13 }
 0x142   : > { %808 = vrot.lane.b32.xlu1 %v1258_v50, %s1381_s13 }
 0x145   : > { %838 = vrot.lane.b32.xlu0 %v1642_v39, %s1381_s13 }
 0x146   : > { %840 = vrot.lane.b32.xlu1 %v1668_v54, %s1381_s13 }
 0x149   : > { %934 = vrot.lane.b32.xlu0 %v1639_v37, %s1382_s14 }
 0x14a   : > { %936 = vrot.lane.b32.xlu1 %v1258_v50, %s1382_s14 }
 0x14d   : > { %802 = vrot.lane.b32.xlu0 %v1650_v43, %s1381_s13 }
 0x14e   : > { %804 = vrot.lane.b32.xlu1 %v1256_v56, %s1381_s13 }
 0x151   : > { %834 = vrot.lane.b32.xlu0 %v1656_v47, %s1381_s13 }
 0x152   : > { %836 = vrot.lane.b32.xlu1 %v1272_v58, %s1381_s13 }
 0x153   : > { %v815_v20 = vpop.permute.xlu0 %814 }
 0x154   : > { %892 = vst.msk [vmem:[%s1767_s17 + $0x48] sm:$0xf] %vm745_vm1, %v815_v20  ;;  %v783_v45 = vpop.permute.xlu1 %782 }
 0x155   : > { %876 = vst.msk [vmem:[%s1767_s17 + $0x8] sm:$0xf] %vm745_vm1, %v783_v45  ;;  %930 = vrot.lane.b32.xlu0 %v1650_v43, %s1382_s14 }
 0x156   : > { %932 = vrot.lane.b32.xlu1 %v1256_v56, %s1382_s14 }
 0x157   : > { %v911_v46 = vpop.permute.xlu0 %910 }
 0x158   : > { %1005 = vst.msk [vmem:[%s1780_s21 + $0x8] sm:$0xf] %vm1002_vm2, %v911_v46  ;;  %v785_v51 = vpop.permute.xlu1 %784 }
 0x159   : > { %877 = vst.msk [vmem:[%s1767_s17 + $0xc] sm:$0xf] %vm745_vm1, %v785_v51  ;;  %962 = vrot.lane.b32.xlu0 %v1656_v47, %s1382_s14 }
 0x15a   : > { %964 = vrot.lane.b32.xlu1 %v1272_v58, %s1382_s14 }
 0x15b   : > { %v943_v53 = vpop.permute.xlu0 %942 }
 0x15c   : > { %1021 = vst.msk [vmem:[%s1780_s21 + $0x48] sm:$0xf] %vm1002_vm2, %v943_v53  ;;  %v817_v57 = vpop.permute.xlu1 %816 }
 0x15d   : > { %893 = vst.msk [vmem:[%s1767_s17 + $0x4c] sm:$0xf] %vm745_vm1, %v817_v57  ;;  %966 = vrot.lane.b32.xlu0 %v1642_v39, %s1382_s14 }
 0x15e   : > { %968 = vrot.lane.b32.xlu1 %v1668_v54, %s1382_s14 }
 0x15f   : > { %v779_v59 = vpop.permute.xlu0 %778 }
 0x160   : > { %v913_v60 = vpop.permute.xlu1 %912  ;;  %874 = vst.msk [vmem:[%s1767_s17] sm:$0xf] %vm745_vm1, %v779_v59 }
 0x161   : > { %1006 = vst.msk [vmem:[%s1780_s21 + $0xc] sm:$0xf] %vm1002_vm2, %v913_v60 }
 0x163   : > { %v811_v61 = vpop.permute.xlu0 %810 }
 0x164   : > { %v945_v62 = vpop.permute.xlu1 %944  ;;  %890 = vst.msk [vmem:[%s1767_s17 + $0x40] sm:$0xf] %vm745_vm1, %v811_v61 }
 0x165   : > { %1022 = vst.msk [vmem:[%s1780_s21 + $0x4c] sm:$0xf] %vm1002_vm2, %v945_v62 }
 0x167   : > { %v907_v63 = vpop.permute.xlu0 %906 }
 0x168   : > { %v813_v0 = vpop.permute.xlu1 %812  ;;  %1003 = vst.msk [vmem:[%s1780_s21] sm:$0xf] %vm1002_vm2, %v907_v63 }
 0x169   : > { %891 = vst.msk [vmem:[%s1767_s17 + $0x44] sm:$0xf] %vm745_vm1, %v813_v0 }
 0x16b   : > { %v939_v1 = vpop.permute.xlu0 %938 }
 0x16c   : > { %v909_v2 = vpop.permute.xlu1 %908  ;;  %1019 = vst.msk [vmem:[%s1780_s21 + $0x40] sm:$0xf] %vm1002_vm2, %v939_v1 }
 0x16d   : > { %1004 = vst.msk [vmem:[%s1780_s21 + $0x4] sm:$0xf] %vm1002_vm2, %v909_v2 }
 0x16f   : > { %v781_v3 = vpop.permute.xlu0 %780 }
 0x170   : > { %v941_v4 = vpop.permute.xlu1 %940  ;;  %875 = vst.msk [vmem:[%s1767_s17 + $0x4] sm:$0xf] %vm745_vm1, %v781_v3 }
 0x171   : > { %1020 = vst.msk [vmem:[%s1780_s21 + $0x44] sm:$0xf] %vm1002_vm2, %v941_v4 }
 0x173   : > { %v791_v5 = vpop.permute.xlu0 %790 }
 0x174   : > { %v793_v6 = vpop.permute.xlu1 %792  ;;  %880 = vst.msk [vmem:[%s1767_s17 + $0x18] sm:$0xf] %vm745_vm1, %v791_v5 }
 0x175   : > { %881 = vst.msk [vmem:[%s1767_s17 + $0x1c] sm:$0xf] %vm745_vm1, %v793_v6 }
 0x177   : > { %v823_v7 = vpop.permute.xlu0 %822 }
 0x178   : > { %v825_v8 = vpop.permute.xlu1 %824  ;;  %896 = vst.msk [vmem:[%s1767_s17 + $0x58] sm:$0xf] %vm745_vm1, %v823_v7 }
 0x179   : > { %897 = vst.msk [vmem:[%s1767_s17 + $0x5c] sm:$0xf] %vm745_vm1, %v825_v8 }
 0x17b   : > { %v919_v9 = vpop.permute.xlu0 %918 }
 0x17c   : > { %v921_v10 = vpop.permute.xlu1 %920  ;;  %1009 = vst.msk [vmem:[%s1780_s21 + $0x18] sm:$0xf] %vm1002_vm2, %v919_v9 }
 0x17d   : > { %1010 = vst.msk [vmem:[%s1780_s21 + $0x1c] sm:$0xf] %vm1002_vm2, %v921_v10 }
 0x17f   : > { %v951_v11 = vpop.permute.xlu0 %950 }
 0x180   : > { %v953_v12 = vpop.permute.xlu1 %952  ;;  %1025 = vst.msk [vmem:[%s1780_s21 + $0x58] sm:$0xf] %vm1002_vm2, %v951_v11 }
 0x181   : > { %1026 = vst.msk [vmem:[%s1780_s21 + $0x5c] sm:$0xf] %vm1002_vm2, %v953_v12 }
 0x183   : > { %v787_v13 = vpop.permute.xlu0 %786 }
 0x184   : > { %v789_v14 = vpop.permute.xlu1 %788  ;;  %878 = vst.msk [vmem:[%s1767_s17 + $0x10] sm:$0xf] %vm745_vm1, %v787_v13 }
 0x185   : > { %879 = vst.msk [vmem:[%s1767_s17 + $0x14] sm:$0xf] %vm745_vm1, %v789_v14 }
 0x187   : > { %v819_v15 = vpop.permute.xlu0 %818 }
 0x188   : > { %v821_v16 = vpop.permute.xlu1 %820  ;;  %894 = vst.msk [vmem:[%s1767_s17 + $0x50] sm:$0xf] %vm745_vm1, %v819_v15 }
 0x189   : > { %895 = vst.msk [vmem:[%s1767_s17 + $0x54] sm:$0xf] %vm745_vm1, %v821_v16 }
 0x18b   : > { %v915_v17 = vpop.permute.xlu0 %914 }
 0x18c   : > { %v917_v18 = vpop.permute.xlu1 %916  ;;  %1007 = vst.msk [vmem:[%s1780_s21 + $0x10] sm:$0xf] %vm1002_vm2, %v915_v17 }
 0x18d   : > { %1008 = vst.msk [vmem:[%s1780_s21 + $0x14] sm:$0xf] %vm1002_vm2, %v917_v18 }
 0x18f   : > { %v947_v19 = vpop.permute.xlu0 %946 }
 0x190   : > { %v949_v21 = vpop.permute.xlu1 %948  ;;  %1023 = vst.msk [vmem:[%s1780_s21 + $0x50] sm:$0xf] %vm1002_vm2, %v947_v19 }
 0x191   : > { %1024 = vst.msk [vmem:[%s1780_s21 + $0x54] sm:$0xf] %vm1002_vm2, %v949_v21 }
 0x193   : > { %v799_v22 = vpop.permute.xlu0 %798 }
 0x194   : > { %v801_v23 = vpop.permute.xlu1 %800  ;;  %884 = vst.msk [vmem:[%s1767_s17 + $0x28] sm:$0xf] %vm745_vm1, %v799_v22 }
 0x195   : > { %885 = vst.msk [vmem:[%s1767_s17 + $0x2c] sm:$0xf] %vm745_vm1, %v801_v23 }
 0x197   : > { %v831_v24 = vpop.permute.xlu0 %830 }
 0x198   : > { %v833_v25 = vpop.permute.xlu1 %832  ;;  %900 = vst.msk [vmem:[%s1767_s17 + $0x68] sm:$0xf] %vm745_vm1, %v831_v24 }
 0x199   : > { %901 = vst.msk [vmem:[%s1767_s17 + $0x6c] sm:$0xf] %vm745_vm1, %v833_v25 }
 0x19b   : > { %v927_v26 = vpop.permute.xlu0 %926 }
 0x19c   : > { %v929_v27 = vpop.permute.xlu1 %928  ;;  %1013 = vst.msk [vmem:[%s1780_s21 + $0x28] sm:$0xf] %vm1002_vm2, %v927_v26 }
 0x19d   : > { %1014 = vst.msk [vmem:[%s1780_s21 + $0x2c] sm:$0xf] %vm1002_vm2, %v929_v27 }
 0x19f   : > { %v959_v28 = vpop.permute.xlu0 %958 }
 0x1a0   : > { %v961_v29 = vpop.permute.xlu1 %960  ;;  %1029 = vst.msk [vmem:[%s1780_s21 + $0x68] sm:$0xf] %vm1002_vm2, %v959_v28 }
 0x1a1   : > { %1030 = vst.msk [vmem:[%s1780_s21 + $0x6c] sm:$0xf] %vm1002_vm2, %v961_v29 }
 0x1a3   : > { %v795_v30 = vpop.permute.xlu0 %794 }
 0x1a4   : > { %v797_v31 = vpop.permute.xlu1 %796  ;;  %882 = vst.msk [vmem:[%s1767_s17 + $0x20] sm:$0xf] %vm745_vm1, %v795_v30 }
 0x1a5   : > { %883 = vst.msk [vmem:[%s1767_s17 + $0x24] sm:$0xf] %vm745_vm1, %v797_v31 }
 0x1a7   : > { %v827_v32 = vpop.permute.xlu0 %826 }
 0x1a8   : > { %v829_v35 = vpop.permute.xlu1 %828  ;;  %898 = vst.msk [vmem:[%s1767_s17 + $0x60] sm:$0xf] %vm745_vm1, %v827_v32 }
 0x1a9   : > { %899 = vst.msk [vmem:[%s1767_s17 + $0x64] sm:$0xf] %vm745_vm1, %v829_v35 }
 0x1ab   : > { %v923_v33 = vpop.permute.xlu0 %922 }
 0x1ac   : > { %v925_v36 = vpop.permute.xlu1 %924  ;;  %1011 = vst.msk [vmem:[%s1780_s21 + $0x20] sm:$0xf] %vm1002_vm2, %v923_v33 }
 0x1ad   : > { %1012 = vst.msk [vmem:[%s1780_s21 + $0x24] sm:$0xf] %vm1002_vm2, %v925_v36 }
 0x1af   : > { %v955_v37 = vpop.permute.xlu0 %954 }
 0x1b0   : > { %v957_v38 = vpop.permute.xlu1 %956  ;;  %1027 = vst.msk [vmem:[%s1780_s21 + $0x60] sm:$0xf] %vm1002_vm2, %v955_v37 }
 0x1b1   : > { %1028 = vst.msk [vmem:[%s1780_s21 + $0x64] sm:$0xf] %vm1002_vm2, %v957_v38 }
 0x1b3   : > { %v807_v39 = vpop.permute.xlu0 %806 }
 0x1b4   : > { %v809_v40 = vpop.permute.xlu1 %808  ;;  %888 = vst.msk [vmem:[%s1767_s17 + $0x38] sm:$0xf] %vm745_vm1, %v807_v39 }
 0x1b5   : > { %889 = vst.msk [vmem:[%s1767_s17 + $0x3c] sm:$0xf] %vm745_vm1, %v809_v40 }
 0x1b7   : > { %v839_v41 = vpop.permute.xlu0 %838 }
 0x1b8   : > { %v841_v42 = vpop.permute.xlu1 %840  ;;  %904 = vst.msk [vmem:[%s1767_s17 + $0x78] sm:$0xf] %vm745_vm1, %v839_v41 }
 0x1b9   : > { %905 = vst.msk [vmem:[%s1767_s17 + $0x7c] sm:$0xf] %vm745_vm1, %v841_v42 }
 0x1bb   : > { %v935_v43 = vpop.permute.xlu0 %934 }
 0x1bc   : > { %v937_v44 = vpop.permute.xlu1 %936  ;;  %1017 = vst.msk [vmem:[%s1780_s21 + $0x38] sm:$0xf] %vm1002_vm2, %v935_v43 }
 0x1bd   : > { %1018 = vst.msk [vmem:[%s1780_s21 + $0x3c] sm:$0xf] %vm1002_vm2, %v937_v44 }
 0x1bf   : > { %v803_v47 = vpop.permute.xlu0 %802 }
 0x1c0   : > { %v805_v48 = vpop.permute.xlu1 %804  ;;  %886 = vst.msk [vmem:[%s1767_s17 + $0x30] sm:$0xf] %vm745_vm1, %v803_v47 }
 0x1c1   : > { %887 = vst.msk [vmem:[%s1767_s17 + $0x34] sm:$0xf] %vm745_vm1, %v805_v48 }
 0x1c3   : > { %v835_v34 = vpop.permute.xlu0 %834 }
 0x1c4   : > { %v837_v49 = vpop.permute.xlu1 %836  ;;  %902 = vst.msk [vmem:[%s1767_s17 + $0x70] sm:$0xf] %vm745_vm1, %v835_v34 }
 0x1c5   : > { %903 = vst.msk [vmem:[%s1767_s17 + $0x74] sm:$0xf] %vm745_vm1, %v837_v49 }
 0x1c7   : > { %v931_v50 = vpop.permute.xlu0 %930 }
 0x1c8   : > { %v933_v52 = vpop.permute.xlu1 %932  ;;  %1015 = vst.msk [vmem:[%s1780_s21 + $0x30] sm:$0xf] %vm1002_vm2, %v931_v50 }
 0x1c9   : > { %1016 = vst.msk [vmem:[%s1780_s21 + $0x34] sm:$0xf] %vm1002_vm2, %v933_v52 }
 0x1cb   : > { %v963_v54 = vpop.permute.xlu0 %962 }
 0x1cc   : > { %v965_v55 = vpop.permute.xlu1 %964  ;;  %1031 = vst.msk [vmem:[%s1780_s21 + $0x70] sm:$0xf] %vm1002_vm2, %v963_v54 }
 0x1cd   : > { %1032 = vst.msk [vmem:[%s1780_s21 + $0x74] sm:$0xf] %vm1002_vm2, %v965_v55 }
 0x1cf   : > { %v967_v56 = vpop.permute.xlu0 %966 }
 0x1d0   : > { %v969_v58 = vpop.permute.xlu1 %968  ;;  %1033 = vst.msk [vmem:[%s1780_s21 + $0x78] sm:$0xf] %vm1002_vm2, %v967_v56 }
 0x1d1   : > { %1034 = vst.msk [vmem:[%s1780_s21 + $0x7c] sm:$0xf] %vm1002_vm2, %v969_v58 }
 0x1d2 PF: > { %s16_s18 = sadd.s32 1, %s1379_s18  }
 0x1d3   : > { %p13_p4 = scmp.ge.s32.totalorder %s16_s18, 4  }
 0x1d5   :  { %15 = sbr.rel (!%p13_p4) target bundleno = 1 (0x1), region = 86 }

// kernel: self_attention_forward.3
= control target key start
LH: loop header
LB: loop body
LE: loop exit
PB: predicated region body
PF: predicated region fallthrough
CT: control target
= control target key end

     0   :  { %s2454_s15 = smov 0   ;;  %s2456_s16 = smov 0   ;;  %s3228_s0 = inlined_call_operand.vmem [shape: bf16[2,256,8], index: 0, kind: input, shape index: {}]   ;;  %s3229_s1 = inlined_call_operand.vmem [shape: bf16[2,256,8], index: 1, kind: input, shape index: {}]   ;;  %s3230_s2 = inlined_call_operand.vmem [shape: bf16[2,256,64], index: 2, kind: input, shape index: {}]   ;;  %s3231_s3 = inlined_call_operand.vmem [shape: f32[2,256,64], index: 3, kind: input, shape index: {}]   ;;  %s3232_s4 = inlined_call_operand.vmem [shape: f32[2,256,64], index: 4, kind: output, shape index: {}]  }
   0x1   :  { %s2458_s17 = smov 0  }
   0x2 LB: > { %s26_s18 = sadd.s32 1, %s2423_s16  ;;  %p1891_p0 = scmp.ge.s32.totalorder %s2427_s17, 1  ;;  %s2427_s17 = sphi %s2458_s17, %s14_s17   ;;  %s2423_s16 = sphi %s2456_s16, %s3279_s16   ;;  %s2419_s15 = sphi %s2454_s15, %s3278_s15  }
   0x3   : > { %p28_p1 = scmp.ge.s32.totalorder %s26_s18, 2  ;;  %p220_p2 = scmp.lt.s32.totalorder %s2427_s17, 3 }
   0x5   : > { %s3281_s18 = smov (%p28_p1, %s26_s18), 0  ;;  %p221_p3 = pnand %p1891_p0, %p220_p2 }
   0x7   : > { %224 = sbr.rel (%p221_p3) target bundleno = 993 (0x3e1), region = 36 }
   0xc   : > { %p274_p4 = scmp.lt.s32.totalorder %s2419_s15, 1  ;;  %vm570_vm0 = vcmask 64512   ;;  %vm1725_vm1 = vcmask 523264  }
   0xe   : > { %s3283_s15 = smov (!%p274_p4, %s2419_s15), 1 }
   0xf   : > { %s2475_s19 = sshll.u32 %s3283_s15, 7  ;;  %s1971_s29 = sshll.u32 %s3283_s15, 8 }
  0x10   : > { %s2481_s22 = scalar_lea.vmem %s3229_s1, %s2475_s19  ;;  %s2498_s25 = scalar_lea.vmem %s3228_s0, %s2475_s19 }
  0x11   : > { %v2165_v0 = vld [vmem:[%s2481_s22 + $0x78] sm:$0xff]   ;;  %v2167_v2 = vld [vmem:[%s2481_s22 + $0x70] sm:$0xff]   ;;  %v2169_v6 = vld [vmem:[%s2481_s22 + $0x68] sm:$0xff]   ;;  %s2717_s28 = scalar_lea.vmem %s3230_s2, %s2475_s19  ;;  %s3116_s6 = scalar_lea.vmem %s3231_s3, %s1971_s29 }
  0x12   : > { %v2166_v1 = vld [vmem:[%s2481_s22 + $0x38] sm:$0xff]   ;;  %2133 = vmatprep.subr.msk.bf16.mxu0 %vm570_vm0, %v2165_v0  ;;  %v2168_v4 = vld [vmem:[%s2481_s22 + $0x30] sm:$0xff]   ;;  %v2170_v7 = vld [vmem:[%s2481_s22 + $0x28] sm:$0xff]   ;;  %s3122_s9 = scalar_lea.vmem %s3232_s4, %s1971_s29 }
  0x13   : > { %v641_v3 = vsel %vm570_vm0, %v2166_v1, 0  ;;  %v638_v5 = vsel %vm570_vm0, %v2168_v4, 0  ;;  %v2181_v8 = vld [vmem:[%s2498_s25] sm:$0xff]   ;;  %v635_v9 = vsel %vm570_vm0, %v2170_v7, 0  ;;  %v2173_v13 = vld [vmem:[%s2481_s22 + $0x58] sm:$0xff]   ;;  %v2175_v16 = vld [vmem:[%s2481_s22 + $0x50] sm:$0xff]  }
  0x14   : > { %1974 = vmatpush3.bf16.xpose.msra.mxu0 %v641_v3  ;;  %v2171_v10 = vld [vmem:[%s2481_s22 + $0x60] sm:$0xff]   ;;  %1989 = vmatprep.mubr.msk.bf16.mxu0 %vm570_vm0, %v2181_v8  ;;  %v2174_v14 = vld [vmem:[%s2481_s22 + $0x18] sm:$0xff]   ;;  %v2176_v17 = vld [vmem:[%s2481_s22 + $0x10] sm:$0xff]  }
  0x15   : > { %2134 = vmatprep.subr.msk.bf16.mxu0 %vm570_vm0, %v2167_v2  ;;  %v2172_v11 = vld [vmem:[%s2481_s22 + $0x20] sm:$0xff]   ;;  %v629_v15 = vsel %vm570_vm0, %v2174_v14, 0  ;;  %v626_v18 = vsel %vm570_vm0, %v2176_v17, 0  ;;  %v2177_v19 = vld [vmem:[%s2481_s22 + $0x48] sm:$0xff]   ;;  %v2183_v26 = vld [vmem:[%s2498_s25 + $0x10] sm:$0xff]  }
  0x16   : > { %v632_v12 = vsel %vm570_vm0, %v2172_v11, 0  ;;  %v2178_v20 = vld [vmem:[%s2481_s22 + $0x8] sm:$0xff]   ;;  %v2179_v22 = vld [vmem:[%s2481_s22 + $0x40] sm:$0xff]   ;;  %v2184_v27 = vld [vmem:[%s2498_s25 + $0x18] sm:$0xff]  }
  0x17   : > { %v623_v21 = vsel %vm570_vm0, %v2178_v20, 0  ;;  %v2180_v23 = vld [vmem:[%s2481_s22] sm:$0xff]   ;;  %v2182_v25 = vld [vmem:[%s2498_s25 + $0x8] sm:$0xff]   ;;  %v2187_v30 = vld [vmem:[%s2498_s25 + $0x30] sm:$0xff]  }
  0x18   : > { %v620_v24 = vsel %vm570_vm0, %v2180_v23, 0  ;;  %v2185_v28 = vld [vmem:[%s2498_s25 + $0x20] sm:$0xff]   ;;  %v2186_v29 = vld [vmem:[%s2498_s25 + $0x28] sm:$0xff]   ;;  %v2188_v31 = vld [vmem:[%s2498_s25 + $0x38] sm:$0xff]  }
  0x19   : > { %v2189_v32 = vld [vmem:[%s2498_s25 + $0x40] sm:$0xff]   ;;  %v2190_v33 = vld [vmem:[%s2498_s25 + $0x48] sm:$0xff]   ;;  %v2191_v34 = vld [vmem:[%s2498_s25 + $0x50] sm:$0xff]  }
  0x1a   : > { %v2192_v35 = vld [vmem:[%s2498_s25 + $0x58] sm:$0xff]   ;;  %v2193_v36 = vld [vmem:[%s2498_s25 + $0x60] sm:$0xff]   ;;  %v2194_v37 = vld [vmem:[%s2498_s25 + $0x68] sm:$0xff]  }
  0x1b   : > { %v2195_v38 = vld [vmem:[%s2498_s25 + $0x70] sm:$0xff]   ;;  %v2196_v39 = vld [vmem:[%s2498_s25 + $0x78] sm:$0xff]  }
  0x1c   : > { %1976 = vmatpush3.bf16.xpose.msra.mxu0 %v638_v5 }
  0x1d   : > { %2135 = vmatprep.subr.msk.bf16.mxu0 %vm570_vm0, %v2169_v6 }
  0x24   : > { %1978 = vmatpush3.bf16.xpose.msra.mxu0 %v635_v9 }
  0x25   : > { %2136 = vmatprep.subr.msk.bf16.mxu0 %vm570_vm0, %v2171_v10 }
  0x2c   : > { %1980 = vmatpush3.bf16.xpose.msra.mxu0 %v632_v12 }
  0x2d   : > { %2137 = vmatprep.subr.msk.bf16.mxu0 %vm570_vm0, %v2173_v13 }
  0x34   : > { %1982 = vmatpush3.bf16.xpose.msra.mxu0 %v629_v15 }
  0x35   : > { %2138 = vmatprep.subr.msk.bf16.mxu0 %vm570_vm0, %v2175_v16 }
  0x3c   : > { %1984 = vmatpush3.bf16.xpose.msra.mxu0 %v626_v18 }
  0x3d   : > { %2139 = vmatprep.subr.msk.bf16.mxu0 %vm570_vm0, %v2177_v19 }
  0x44   : > { %1986 = vmatpush3.bf16.xpose.msra.mxu0 %v623_v21 }
  0x45   : > { %2140 = vmatprep.subr.msk.bf16.mxu0 %vm570_vm0, %v2179_v22 }
  0x4c   : > { %1988 = vmatpush3.bf16.xpose.msra.mxu0 %v620_v24 }
  0x53   : > { %1990 = vmatmul.mubr.msk.bf16.vlgmr.msra.gmra.mxu0 %vm570_vm0, %v2181_v8 }
  0x54   : > { %1991 = vmatprep.mubr.msk.bf16.mxu0 %vm570_vm0, %v2182_v25 }
  0x5b   : > { %1992 = vmatmul.mubr.msk.bf16.gmra.mxu0 %vm570_vm0, %v2182_v25 }
  0x5c   : > { %1993 = vmatprep.mubr.msk.bf16.mxu0 %vm570_vm0, %v2183_v26 }
  0x63   : > { %1994 = vmatmul.mubr.msk.bf16.gmra.mxu0 %vm570_vm0, %v2183_v26 }
  0x64   : > { %1995 = vmatprep.mubr.msk.bf16.mxu0 %vm570_vm0, %v2184_v27 }
  0x6b   : > { %1996 = vmatmul.mubr.msk.bf16.gmra.mxu0 %vm570_vm0, %v2184_v27 }
  0x6c   : > { %1997 = vmatprep.mubr.msk.bf16.mxu0 %vm570_vm0, %v2185_v28 }
  0x73   : > { %1998 = vmatmul.mubr.msk.bf16.gmra.mxu0 %vm570_vm0, %v2185_v28 }
  0x74   : > { %1999 = vmatprep.mubr.msk.bf16.mxu0 %vm570_vm0, %v2186_v29 }
  0x7b   : > { %2000 = vmatmul.mubr.msk.bf16.gmra.mxu0 %vm570_vm0, %v2186_v29 }
  0x7c   : > { %2001 = vmatprep.mubr.msk.bf16.mxu0 %vm570_vm0, %v2187_v30 }
  0x83   : > { %2002 = vmatmul.mubr.msk.bf16.gmra.mxu0 %vm570_vm0, %v2187_v30 }
  0x84   : > { %2003 = vmatprep.mubr.msk.bf16.mxu0 %vm570_vm0, %v2188_v31 }
  0x8b   : > { %2004 = vmatmul.mubr.msk.bf16.gmra.mxu0 %vm570_vm0, %v2188_v31 }
  0x8c   : > { %2005 = vmatprep.mubr.msk.bf16.mxu0 %vm570_vm0, %v2189_v32 }
  0x93   : > { %2006 = vmatmul.mubr.msk.bf16.gmra.mxu0 %vm570_vm0, %v2189_v32 }
  0x94   : > { %2007 = vmatprep.mubr.msk.bf16.mxu0 %vm570_vm0, %v2190_v33 }
  0x9b   : > { %2008 = vmatmul.mubr.msk.bf16.gmra.mxu0 %vm570_vm0, %v2190_v33 }
  0x9c   : > { %2009 = vmatprep.mubr.msk.bf16.mxu0 %vm570_vm0, %v2191_v34 }
  0xa3   : > { %2010 = vmatmul.mubr.msk.bf16.gmra.mxu0 %vm570_vm0, %v2191_v34 }
  0xa4   : > { %2011 = vmatprep.mubr.msk.bf16.mxu0 %vm570_vm0, %v2192_v35 }
  0xab   : > { %2012 = vmatmul.mubr.msk.bf16.gmra.mxu0 %vm570_vm0, %v2192_v35 }
  0xac   : > { %2013 = vmatprep.mubr.msk.bf16.mxu0 %vm570_vm0, %v2193_v36 }
  0xb3   : > { %2014 = vmatmul.mubr.msk.bf16.gmra.mxu0 %vm570_vm0, %v2193_v36 }
  0xb4   : > { %2015 = vmatprep.mubr.msk.bf16.mxu0 %vm570_vm0, %v2194_v37 }
  0xbb   : > { %2016 = vmatmul.mubr.msk.bf16.gmra.mxu0 %vm570_vm0, %v2194_v37 }
  0xbc   : > { %2017 = vmatprep.mubr.msk.bf16.mxu0 %vm570_vm0, %v2195_v38 }
  0xc3   : > { %2018 = vmatmul.mubr.msk.bf16.gmra.mxu0 %vm570_vm0, %v2195_v38 }
  0xc4   : > { %2019 = vmatprep.mubr.msk.bf16.mxu0 %vm570_vm0, %v2196_v39 }
  0xcb   : > { %2020 = vmatmul.mubr.msk.bf16.gmra.mxu0 %vm570_vm0, %v2196_v39 }
 0x113   : > { %v701_v40 = vpop.f32.mrf.mxu0 }
 0x114   : > { %v2569_v42 = vmul.f32 0.125, %v701_v40 }
 0x115   : > { %v703_v41 = vpop.f32.mrf.mxu0 }
 0x116   : > { %v2571_v43 = vmul.f32 0.125, %v703_v41 }
 0x117   : > { %v705_v44 = vpop.f32.mrf.mxu0 }
 0x118   : > { %v924_v45 = vmax.f32 %v2569_v42, %v2571_v43  ;;  %v2575_v47 = vmul.f32 0.125, %v705_v44 }
 0x119   : > { %v707_v46 = vpop.f32.mrf.mxu0 }
 0x11a   : > { %v2577_v48 = vmul.f32 0.125, %v707_v46  ;;  %925 = vmax.xlane.f32.xlu0 %v924_v45 }
 0x11b   : > { %v711_v49 = vpop.f32.mrf.mxu0 }
 0x11c   : > { %v927_v50 = vmax.f32 %v2575_v47, %v2577_v48  ;;  %v2581_v52 = vmul.f32 0.125, %v711_v49 }
 0x11d   : > { %v713_v51 = vpop.f32.mrf.mxu0 }
 0x11e   : > { %v2583_v53 = vmul.f32 0.125, %v713_v51  ;;  %928 = vmax.xlane.f32.xlu0 %v927_v50 }
 0x11f   : > { %v715_v54 = vpop.f32.mrf.mxu0 }
 0x120   : > { %v930_v55 = vmax.f32 %v2581_v52, %v2583_v53  ;;  %v2587_v57 = vmul.f32 0.125, %v715_v54 }
 0x121   : > { %v717_v56 = vpop.f32.mrf.mxu0 }
 0x122   : > { %v2589_v58 = vmul.f32 0.125, %v717_v56  ;;  %931 = vmax.xlane.f32.xlu1 %v930_v55 }
 0x123   : > { %v721_v59 = vpop.f32.mrf.mxu0 }
 0x124   : > { %v933_v60 = vmax.f32 %v2587_v57, %v2589_v58  ;;  %v2593_v62 = vmul.f32 0.125, %v721_v59 }
 0x125   : > { %v723_v61 = vpop.f32.mrf.mxu0 }
 0x126   : > { %v2595_v63 = vmul.f32 0.125, %v723_v61  ;;  %934 = vmax.xlane.f32.xlu1 %v933_v60 }
 0x127   : > { %v725_v0 = vpop.f32.mrf.mxu0 }
 0x128   : > { %v936_v1 = vmax.f32 %v2593_v62, %v2595_v63  ;;  %v2599_v3 = vmul.f32 0.125, %v725_v0 }
 0x129   : > { %v727_v2 = vpop.f32.mrf.mxu0 }
 0x12a   : > { %v2601_v4 = vmul.f32 0.125, %v727_v2  ;;  %937 = vmax.xlane.f32.xlu0 %v936_v1 }
 0x12b   : > { %v731_v5 = vpop.f32.mrf.mxu0 }
 0x12c   : > { %v939_v6 = vmax.f32 %v2599_v3, %v2601_v4  ;;  %v2605_v8 = vmul.f32 0.125, %v731_v5 }
 0x12d   : > { %v733_v7 = vpop.f32.mrf.mxu0 }
 0x12e   : > { %v2607_v9 = vmul.f32 0.125, %v733_v7  ;;  %940 = vmax.xlane.f32.xlu1 %v939_v6 }
 0x12f   : > { %v735_v10 = vpop.f32.mrf.mxu0 }
 0x130   : > { %v942_v11 = vmax.f32 %v2605_v8, %v2607_v9  ;;  %v2611_v13 = vmul.f32 0.125, %v735_v10 }
 0x131   : > { %v737_v12 = vpop.f32.mrf.mxu0 }
 0x132   : > { %v2613_v14 = vmul.f32 0.125, %v737_v12  ;;  %943 = vmax.xlane.f32.xlu0 %v942_v11 }
 0x133   : > { %v741_v15 = vpop.f32.mrf.mxu0 }
 0x134   : > { %v2615_v16 = vmul.f32 0.125, %v741_v15  ;;  %v945_v17 = vmax.f32 %v2611_v13, %v2613_v14 }
 0x135   : > { %v743_v18 = vpop.f32.mrf.mxu0 }
 0x136   : > { %v2619_v19 = vmul.f32 0.125, %v743_v18  ;;  %946 = vmax.xlane.f32.xlu1 %v945_v17 }
 0x137   : > { %v745_v20 = vpop.f32.mrf.mxu0 }
 0x138   : > { %v2621_v21 = vmul.f32 0.125, %v745_v20  ;;  %v948_v22 = vmax.f32 %v2615_v16, %v2619_v19 }
 0x139   : > { %v747_v23 = vpop.f32.mrf.mxu0 }
 0x13a   : > { %v2625_v24 = vmul.f32 0.125, %v747_v23  ;;  %949 = vmax.xlane.f32.xlu0 %v948_v22 }
 0x13b   : > { %v751_v25 = vpop.f32.mrf.mxu0 }
 0x13c   : > { %v2627_v26 = vmul.f32 0.125, %v751_v25  ;;  %v951_v27 = vmax.f32 %v2621_v21, %v2625_v24 }
 0x13d   : > { %v753_v28 = vpop.f32.mrf.mxu0 }
 0x13e   : > { %v2631_v29 = vmul.f32 0.125, %v753_v28  ;;  %952 = vmax.xlane.f32.xlu1 %v951_v27 }
 0x13f   : > { %v755_v30 = vpop.f32.mrf.mxu0 }
 0x140   : > { %v2633_v31 = vmul.f32 0.125, %v755_v30  ;;  %v954_v32 = vmax.f32 %v2627_v26, %v2631_v29 }
 0x141   : > { %v757_v33 = vpop.f32.mrf.mxu0 }
 0x142   : > { %v2637_v34 = vmul.f32 0.125, %v757_v33  ;;  %955 = vmax.xlane.f32.xlu0 %v954_v32 }
 0x143   : > { %v761_v35 = vpop.f32.mrf.mxu0 }
 0x144   : > { %v2639_v36 = vmul.f32 0.125, %v761_v35  ;;  %v957_v37 = vmax.f32 %v2633_v31, %v2637_v34 }
 0x145   : > { %v763_v38 = vpop.f32.mrf.mxu0 }
 0x146   : > { %v2643_v39 = vmul.f32 0.125, %v763_v38  ;;  %958 = vmax.xlane.f32.xlu1 %v957_v37 }
 0x147   : > { %v765_v40 = vpop.f32.mrf.mxu0 }
 0x148   : > { %v2645_v41 = vmul.f32 0.125, %v765_v40  ;;  %v960_v44 = vmax.f32 %v2639_v36, %v2643_v39 }
 0x149   : > { %v767_v45 = vpop.f32.mrf.mxu0 }
 0x14a   : > { %v2649_v46 = vmul.f32 0.125, %v767_v45  ;;  %961 = vmax.xlane.f32.xlu0 %v960_v44 }
 0x14b   : > { %v771_v49 = vpop.f32.mrf.mxu0 }
 0x14c   : > { %v2651_v50 = vmul.f32 0.125, %v771_v49  ;;  %v963_v51 = vmax.f32 %v2645_v41, %v2649_v46 }
 0x14d   : > { %v773_v54 = vpop.f32.mrf.mxu0 }
 0x14e   : > { %v2655_v55 = vmul.f32 0.125, %v773_v54  ;;  %964 = vmax.xlane.f32.xlu1 %v963_v51 }
 0x14f   : > { %v775_v56 = vpop.f32.mrf.mxu0 }
 0x150   : > { %v2657_v59 = vmul.f32 0.125, %v775_v56  ;;  %v966_v60 = vmax.f32 %v2651_v50, %v2655_v55 }
 0x151   : > { %v777_v61 = vpop.f32.mrf.mxu0 }
 0x152   : > { %v2661_v0 = vmul.f32 0.125, %v777_v61  ;;  %967 = vmax.xlane.f32.xlu0 %v966_v60 }
 0x153   : > { %v781_v1 = vpop.f32.mrf.mxu0 }
 0x154   : > { %v2663_v2 = vmul.f32 0.125, %v781_v1  ;;  %v969_v5 = vmax.f32 %v2657_v59, %v2661_v0 }
 0x155   : > { %v783_v6 = vpop.f32.mrf.mxu0 }
 0x156   : > { %v2667_v7 = vmul.f32 0.125, %v783_v6  ;;  %970 = vmax.xlane.f32.xlu1 %v969_v5 }
 0x157   : > { %v785_v10 = vpop.f32.mrf.mxu0 }
 0x158   : > { %v2669_v11 = vmul.f32 0.125, %v785_v10  ;;  %v972_v12 = vmax.f32 %v2663_v2, %v2667_v7 }
 0x159   : > { %v787_v15 = vpop.f32.mrf.mxu0 }
 0x15a   : > { %v2673_v17 = vmul.f32 0.125, %v787_v15  ;;  %973 = vmax.xlane.f32.xlu0 %v972_v12 }
 0x15b   : > { %v791_v18 = vpop.f32.mrf.mxu0 }
 0x15c   : > { %v2675_v20 = vmul.f32 0.125, %v791_v18  ;;  %v975_v22 = vmax.f32 %v2669_v11, %v2673_v17 }
 0x15d   : > { %v793_v23 = vpop.f32.mrf.mxu0 }
 0x15e   : > { %v2679_v25 = vmul.f32 0.125, %v793_v23  ;;  %976 = vmax.xlane.f32.xlu1 %v975_v22 }
 0x15f   : > { %v795_v27 = vpop.f32.mrf.mxu0 }
 0x160   : > { %v2681_v28 = vmul.f32 0.125, %v795_v27  ;;  %v978_v30 = vmax.f32 %v2675_v20, %v2679_v25 }
 0x161   : > { %v797_v32 = vpop.f32.mrf.mxu0 }
 0x162   : > { %v2685_v33 = vmul.f32 0.125, %v797_v32  ;;  %979 = vmax.xlane.f32.xlu0 %v978_v30  ;;  %v2197_v30 = vld [vmem:[%s2717_s28 + $0x78] sm:$0xff]  }
 0x163   : > { %v801_v35 = vpop.f32.mrf.mxu0  ;;  %v2198_v32 = vld [vmem:[%s2717_s28 + $0x38] sm:$0xff]   ;;  %2021 = vmatprep.subr.bf16.mxu1 %v2197_v30 }
 0x164   : > { %v2687_v37 = vmul.f32 0.125, %v801_v35  ;;  %v981_v38 = vmax.f32 %v2681_v28, %v2685_v33  ;;  %2022 = vmatpush3.bf16.msra.mxu1 %v2198_v32 }
 0x165   : > { %v803_v40 = vpop.f32.mrf.mxu0 }
 0x166   : > { %v2691_v44 = vmul.f32 0.125, %v803_v40  ;;  %982 = vmax.xlane.f32.xlu1 %v981_v38  ;;  %v2199_v38 = vld [vmem:[%s2717_s28 + $0x70] sm:$0xff]  }
 0x167   : > { %v805_v45 = vpop.f32.mrf.mxu0  ;;  %v2200_v40 = vld [vmem:[%s2717_s28 + $0x30] sm:$0xff]   ;;  %2023 = vmatprep.subr.bf16.mxu1 %v2199_v38 }
 0x168   : > { %v2693_v49 = vmul.f32 0.125, %v805_v45  ;;  %v984_v51 = vmax.f32 %v2687_v37, %v2691_v44  ;;  %v2201_v45 = vld [vmem:[%s2717_s28 + $0x68] sm:$0xff]   ;;  %2024 = vmatpush3.bf16.msra.mxu1 %v2200_v40 }
 0x169   : > { %v807_v54 = vpop.f32.mrf.mxu0  ;;  %2025 = vmatprep.subr.bf16.mxu1 %v2201_v45 }
 0x16a   : > { %v2697_v56 = vmul.f32 0.125, %v807_v54  ;;  %985 = vmax.xlane.f32.xlu0 %v984_v51 }
 0x16b   : > { %v811_v60 = vpop.f32.mrf.mxu0 }
 0x16c   : > { %v2699_v61 = vmul.f32 0.125, %v811_v60  ;;  %v987_v1 = vmax.f32 %v2693_v49, %v2697_v56 }
 0x16d   : > { %v813_v5 = vpop.f32.mrf.mxu0 }
 0x16e   : > { %v2703_v6 = vmul.f32 0.125, %v813_v5  ;;  %988 = vmax.xlane.f32.xlu1 %v987_v1 }
 0x16f   : > { %v815_v10 = vpop.f32.mrf.mxu0 }
 0x170   : > { %v2705_v12 = vmul.f32 0.125, %v815_v10  ;;  %v990_v15 = vmax.f32 %v2699_v61, %v2703_v6 }
 0x171   : > { %v817_v18 = vpop.f32.mrf.mxu0 }
 0x172   : > { %v2709_v22 = vmul.f32 0.125, %v817_v18  ;;  %991 = vmax.xlane.f32.xlu0 %v990_v15 }
 0x173   : > { %v821_v27 = vpop.f32.mrf.mxu0 }
 0x174   : > { %3248 = vst [vmem:[#allocation2_spill] sm:$0xff] %v2709_v22  ;;  %v993_v23 = vmax.f32 %v2705_v12, %v2709_v22 }
 0x175   : > { %v823_v35 = vpop.f32.mrf.mxu0 }
 0x176   : > { %994 = vmax.xlane.f32.xlu1 %v993_v23 }
 0x177   : > { %v825_v51 = vpop.f32.mrf.mxu0 }
 0x179   : > { %v827_v54 = vpop.f32.mrf.mxu0 }
 0x17b   : > { %v2726_v10 = vpop.f32.mrf.mxu0 }
 0x17d   : > { %v833_v38 = vpop.f32.mrf.mxu0 }
 0x1a3   : > { %v926_v60 = vpop.xlane.xlu0 %925 }
 0x1a4   : > { %v1020_v1 = vsub.f32 %v2569_v42, %v926_v60  ;;  %v1021_v5 = vsub.f32 %v2571_v43, %v926_v60  ;;  %v2732_v60 = vpop.f32.mrf.mxu0 }
 0x1a6   : > { %v1084_v15 = vmul.f32 1.442695, %v1020_v1  ;;  %v1086_v18 = vmul.f32 1.442695, %v1021_v5 }
 0x1a7   : > { %v929_v23 = vpop.xlane.xlu0 %928 }
 0x1a8   : > { %2213 = vpow2.f32 %v1084_v15  ;;  %v1022_v30 = vsub.f32 %v2575_v47, %v929_v23  ;;  %v1023_v32 = vsub.f32 %v2577_v48, %v929_v23 }
 0x1a9   : > { %2215 = vpow2.f32 %v1086_v18  ;;  %v837_v18 = vpop.f32.mrf.mxu0 }
 0x1aa   : > { %v1088_v40 = vmul.f32 1.442695, %v1022_v30  ;;  %v1090_v45 = vmul.f32 1.442695, %v1023_v32 }
 0x1ab   : > { %v932_v22 = vpop.xlane.xlu1 %931 }
 0x1ac   : > { %2217 = vpow2.f32 %v1088_v40  ;;  %v1024_v42 = vsub.f32 %v2581_v52, %v932_v22  ;;  %v1025_v43 = vsub.f32 %v2583_v53, %v932_v22  ;;  %v2738_v22 = vpop.f32.mrf.mxu0 }
 0x1ad   : > { %2219 = vpow2.f32 %v1090_v45 }
 0x1ae   : > { %v1092_v1 = vmul.f32 1.442695, %v1024_v42  ;;  %v1094_v5 = vmul.f32 1.442695, %v1025_v43  ;;  %v2746_v43 = vmul.f32 0.125, %v823_v35  ;;  %v2756_v35 = vmul.f32 0.125, %v825_v51 }
 0x1af   : > { %v935_v15 = vpop.xlane.xlu1 %934 }
 0x1b0   : > { %2221 = vpow2.f32 %v1092_v1  ;;  %v1026_v47 = vsub.f32 %v2587_v57, %v935_v15  ;;  %v1027_v48 = vsub.f32 %v2589_v58, %v935_v15  ;;  %v2744_v58 = vmul.f32 0.125, %v821_v27  ;;  %v843_v15 = vpop.f32.mrf.mxu0 }
 0x1b1   : > { %2223 = vpow2.f32 %v1094_v5 }
 0x1b2   : > { %v1096_v23 = vmul.f32 1.442695, %v1026_v47  ;;  %v1098_v30 = vmul.f32 1.442695, %v1027_v48 }
 0x1b3   : > { %v938_v32 = vpop.xlane.xlu0 %937 }
 0x1b4   : > { %2225 = vpow2.f32 %v1096_v23  ;;  %v1028_v52 = vsub.f32 %v2593_v62, %v938_v32  ;;  %v1029_v53 = vsub.f32 %v2595_v63, %v938_v32 }
 0x1b5   : > { %v2740_v40 = vpop.eup %2213  ;;  %2227 = vpow2.f32 %v1098_v30  ;;  %v2758_v30 = vmul.f32 0.125, %v827_v54 }
 0x1b6   : > { %v2742_v45 = vpop.eup %2215  ;;  %v1100_v57 = vmul.f32 1.442695, %v1028_v52  ;;  %v1102_v42 = vmul.f32 1.442695, %v1029_v53 }
 0x1b7   : > { %v941_v1 = vpop.xlane.xlu1 %940  ;;  %v1212_v5 = vadd.f32 %v2742_v45, %v2740_v40 }
 0x1b8   : > { %2229 = vpow2.f32 %v1100_v57  ;;  %v1030_v62 = vsub.f32 %v2599_v3, %v941_v1  ;;  %v1031_v63 = vsub.f32 %v2601_v4, %v941_v1  ;;  %v996_v3 = vmax.f32 %v2744_v58, %v2746_v43  ;;  %v845_v57 = vpop.f32.mrf.mxu0 }
 0x1b9   : > { %v2752_v47 = vpop.eup %2217  ;;  %2231 = vpow2.f32 %v1102_v42  ;;  %1213 = vadd.xlane.f32.xlu0 %v1212_v5  ;;  %v2771_v5 = vmul.f32 0.125, %v2726_v10  ;;  %v2202_v10 = vld [vmem:[%s2717_s28 + $0x28] sm:$0xff]  }
 0x1ba   : > { %v2754_v48 = vpop.eup %2219  ;;  %v1104_v27 = vmul.f32 1.442695, %v1030_v62  ;;  %v1106_v23 = vmul.f32 1.442695, %v1031_v63  ;;  %v2773_v62 = vmul.f32 0.125, %v833_v38  ;;  %2026 = vmatpush3.bf16.msra.mxu1 %v2202_v10  ;;  %v2804_v10 = vmul.f32 0.125, %v2738_v22 }
 0x1bb   : > { %v944_v32 = vpop.xlane.xlu0 %943  ;;  %v1215_v52 = vadd.f32 %v2754_v48, %v2752_v47  ;;  %v2205_v22 = vld [vmem:[%s2717_s28 + $0x58] sm:$0xff]  }
 0x1bc   : > { %2233 = vpow2.f32 %v1104_v27  ;;  %v1032_v4 = vsub.f32 %v2605_v8, %v944_v32  ;;  %v1033_v53 = vsub.f32 %v2607_v9, %v944_v32  ;;  %v999_v9 = vmax.f32 %v2756_v35, %v2758_v30  ;;  %v847_v32 = vpop.f32.mrf.mxu0 }
 0x1bd   : > { %v2766_v42 = vpop.eup %2221  ;;  %2235 = vpow2.f32 %v1106_v23  ;;  %1216 = vadd.xlane.f32.xlu1 %v1215_v52  ;;  %997 = vmax.xlane.f32.xlu0 %v996_v3 }
 0x1be   : > { %3249 = vst [vmem:[#allocation3_spill] sm:$0xff] %v2766_v42  ;;  %v2768_v51 = vpop.eup %2223  ;;  %v1108_v54 = vmul.f32 1.442695, %v1032_v4  ;;  %v1110_v1 = vmul.f32 1.442695, %v1033_v53  ;;  %v2787_v53 = vmul.f32 0.125, %v2732_v60 }
 0x1bf   : > { %v947_v63 = vpop.xlane.xlu1 %946  ;;  %v1218_v8 = vadd.f32 %v2768_v51, %v2766_v42  ;;  %v2204_v42 = vld [vmem:[%s2717_s28 + $0x20] sm:$0xff]  }
 0x1c0   : > { %2237 = vpow2.f32 %v1108_v54  ;;  %v1034_v27 = vsub.f32 %v2611_v13, %v947_v63  ;;  %v1035_v23 = vsub.f32 %v2613_v14, %v947_v63  ;;  %v2789_v54 = vmul.f32 0.125, %v837_v18  ;;  %v2203_v63 = vld [vmem:[%s2717_s28 + $0x60] sm:$0xff]  }
 0x1c1   : > { %v2781_v52 = vpop.eup %2225  ;;  %2239 = vpow2.f32 %v1110_v1  ;;  %1219 = vadd.xlane.f32.xlu0 %v1218_v8  ;;  %1000 = vmax.xlane.f32.xlu1 %v999_v9  ;;  %v1002_v1 = vmax.f32 %v2771_v5, %v2773_v62 }
 0x1c2   : > { %3250 = vst [vmem:[#allocation4_spill] sm:$0xff] %v2781_v52  ;;  %v2784_v38 = vpop.eup %2227  ;;  %v1112_v3 = vmul.f32 1.442695, %v1034_v27  ;;  %v1114_v4 = vmul.f32 1.442695, %v1035_v23  ;;  %v851_v27 = vpop.f32.mrf.mxu0  ;;  %2027 = vmatprep.subr.bf16.mxu1 %v2203_v63 }
 0x1c3   : > { %v950_v13 = vpop.xlane.xlu0 %949  ;;  %v1221_v14 = vadd.f32 %v2784_v38, %v2781_v52  ;;  %2028 = vmatpush3.bf16.msra.mxu1 %v2204_v42 }
 0x1c4   : > { %2241 = vpow2.f32 %v1112_v3  ;;  %v1036_v8 = vsub.f32 %v2615_v16, %v950_v13  ;;  %v1037_v9 = vsub.f32 %v2619_v19, %v950_v13  ;;  %v2806_v3 = vmul.f32 0.125, %v843_v15  ;;  %2029 = vmatprep.subr.bf16.mxu1 %v2205_v22 }
 0x1c5   : > { %v2798_v60 = vpop.eup %2229  ;;  %2243 = vpow2.f32 %v1114_v4  ;;  %1222 = vadd.xlane.f32.xlu1 %v1221_v14  ;;  %1003 = vmax.xlane.f32.xlu0 %v1002_v1  ;;  %v1005_v4 = vmax.f32 %v2787_v53, %v2789_v54  ;;  %v853_v1 = vpop.f32.mrf.mxu0  ;;  %v2835_v22 = vmul.f32 0.125, %v851_v27 }
 0x1c6   : > { %3251 = vst [vmem:[#allocation5_spill] sm:$0xff] %v2798_v60  ;;  %v2800_v18 = vpop.eup %2231  ;;  %v1116_v23 = vmul.f32 1.442695, %v1036_v8  ;;  %v1118_v52 = vmul.f32 1.442695, %v1037_v9  ;;  %v1008_v42 = vmax.f32 %v2804_v10, %v2806_v3 }
 0x1c7   : > { %v953_v16 = vpop.xlane.xlu1 %952  ;;  %v1224_v19 = vadd.f32 %v2800_v18, %v2798_v60  ;;  %v2819_v60 = vmul.f32 0.125, %v845_v57  ;;  %v855_v57 = vpop.f32.mrf.mxu0 }
 0x1c8   : > { %2245 = vpow2.f32 %v1116_v23  ;;  %v1038_v13 = vsub.f32 %v2621_v21, %v953_v16  ;;  %v1039_v14 = vsub.f32 %v2625_v24, %v953_v16  ;;  %v2821_v23 = vmul.f32 0.125, %v847_v32 }
 0x1c9   : > { %v2814_v63 = vpop.eup %2233  ;;  %2247 = vpow2.f32 %v1118_v52  ;;  %1225 = vadd.xlane.f32.xlu0 %v1224_v19  ;;  %1006 = vmax.xlane.f32.xlu1 %v1005_v4  ;;  %v2206_v52 = vld [vmem:[%s2717_s28 + $0x18] sm:$0xff]  }
 0x1ca   : > { %3252 = vst [vmem:[#allocation6_spill] sm:$0xff] %v2814_v63  ;;  %v2817_v15 = vpop.eup %2235  ;;  %v1120_v8 = vmul.f32 1.442695, %v1038_v13  ;;  %v1122_v9 = vmul.f32 1.442695, %v1039_v14  ;;  %2030 = vmatpush3.bf16.msra.mxu1 %v2206_v52 }
 0x1cb   : > { %v956_v21 = vpop.xlane.xlu0 %955  ;;  %v1227_v24 = vadd.f32 %v2817_v15, %v2814_v63  ;;  %v2207_v63 = vld [vmem:[%s2717_s28 + $0x50] sm:$0xff]  }
 0x1cc   : > { %2249 = vpow2.f32 %v1120_v8  ;;  %v1040_v16 = vsub.f32 %v2627_v26, %v956_v21  ;;  %v1041_v19 = vsub.f32 %v2631_v29, %v956_v21  ;;  %v2837_v8 = vmul.f32 0.125, %v853_v1  ;;  %v2208_v21 = vld [vmem:[%s2717_s28 + $0x10] sm:$0xff]   ;;  %2031 = vmatprep.subr.bf16.mxu1 %v2207_v63 }
 0x1cd   : > { %v2830_v4 = vpop.eup %2237  ;;  %2251 = vpow2.f32 %v1122_v9  ;;  %1228 = vadd.xlane.f32.xlu1 %v1227_v24  ;;  %1009 = vmax.xlane.f32.xlu0 %v1008_v42  ;;  %v1011_v9 = vmax.f32 %v2819_v60, %v2821_v23  ;;  %v857_v24 = vpop.f32.mrf.mxu0 }
 0x1ce   : > { %3253 = vst [vmem:[#allocation7_spill] sm:$0xff] %v2830_v4  ;;  %v2832_v32 = vpop.eup %2239  ;;  %v1124_v13 = vmul.f32 1.442695, %v1040_v16  ;;  %v1126_v14 = vmul.f32 1.442695, %v1041_v19  ;;  %2032 = vmatpush3.bf16.msra.mxu1 %v2208_v21  ;;  %v1014_v63 = vmax.f32 %v2835_v22, %v2837_v8 }
 0x1cf   : > { %3254 = vst [vmem:[#allocation8_spill] sm:$0xff] %v2832_v32  ;;  %v959_v26 = vpop.xlane.xlu1 %958  ;;  %v1230_v29 = vadd.f32 %v2832_v32, %v2830_v4  ;;  %v2209_v4 = vld [vmem:[%s2717_s28 + $0x48] sm:$0xff]   ;;  %v2851_v32 = vmul.f32 0.125, %v855_v57 }
 0x1d0   : > { %2253 = vpow2.f32 %v1124_v13  ;;  %v1042_v42 = vsub.f32 %v2633_v31, %v959_v26  ;;  %v1043_v52 = vsub.f32 %v2637_v34, %v959_v26  ;;  %v2853_v13 = vmul.f32 0.125, %v857_v24  ;;  %2033 = vmatprep.subr.bf16.mxu1 %v2209_v4 }
 0x1d1   : > { %v2846_v27 = vpop.eup %2241  ;;  %2255 = vpow2.f32 %v1126_v14  ;;  %1231 = vadd.xlane.f32.xlu0 %v1230_v29  ;;  %1012 = vmax.xlane.f32.xlu1 %v1011_v9  ;;  %v2210_v14 = vld [vmem:[%s2717_s28 + $0x8] sm:$0xff]  }
 0x1d2   : > { %v2848_v1 = vpop.eup %2243  ;;  %v1128_v16 = vmul.f32 1.442695, %v1042_v42  ;;  %v1130_v19 = vmul.f32 1.442695, %v1043_v52  ;;  %2034 = vmatpush3.bf16.msra.mxu1 %v2210_v14  ;;  %v2211_v42 = vld [vmem:[%s2717_s28 + $0x40] sm:$0xff]  }
 0x1d3   : > { %v962_v31 = vpop.xlane.xlu0 %961  ;;  %v1233_v34 = vadd.f32 %v2848_v1, %v2846_v27  ;;  %2035 = vmatprep.subr.bf16.mxu1 %v2211_v42 }
 0x1d4   : > { %2257 = vpow2.f32 %v1128_v16  ;;  %v1044_v26 = vsub.f32 %v2639_v36, %v962_v31  ;;  %v1045_v29 = vsub.f32 %v2643_v39, %v962_v31  ;;  %v1017_v36 = vmax.f32 %v2851_v32, %v2853_v13  ;;  %v2212_v39 = vld [vmem:[%s2717_s28] sm:$0xff]  }
 0x1d5   : > { %v2862_v57 = vpop.eup %2245  ;;  %2259 = vpow2.f32 %v1130_v19  ;;  %1234 = vadd.xlane.f32.xlu1 %v1233_v34  ;;  %1015 = vmax.xlane.f32.xlu0 %v1014_v63 }
 0x1d6   : > { %v2864_v9 = vpop.eup %2247  ;;  %v1132_v21 = vmul.f32 1.442695, %v1044_v26  ;;  %v1134_v24 = vmul.f32 1.442695, %v1045_v29  ;;  %2036 = vmatpush3.bf16.msra.mxu1 %v2212_v39 }
 0x1d7   : > { %v965_v52 = vpop.xlane.xlu1 %964  ;;  %v1236_v16 = vadd.f32 %v2864_v9, %v2862_v57 }
 0x1d8   : > { %2261 = vpow2.f32 %v1132_v21  ;;  %v1046_v4 = vsub.f32 %v2645_v41, %v965_v52  ;;  %v1047_v19 = vsub.f32 %v2649_v46, %v965_v52 }
 0x1d9   : > { %v2874_v31 = vpop.eup %2249  ;;  %2263 = vpow2.f32 %v1134_v24  ;;  %1237 = vadd.xlane.f32.xlu0 %v1236_v16  ;;  %1018 = vmax.xlane.f32.xlu1 %v1017_v36 }
 0x1da   : > { %v2876_v34 = vpop.eup %2251  ;;  %v1136_v63 = vmul.f32 1.442695, %v1046_v4  ;;  %v1138_v14 = vmul.f32 1.442695, %v1047_v19 }
 0x1db   : > { %v968_v26 = vpop.xlane.xlu0 %967  ;;  %v1239_v29 = vadd.f32 %v2876_v34, %v2874_v31 }
 0x1dc   : > { %2265 = vpow2.f32 %v1136_v63  ;;  %v1048_v41 = vsub.f32 %v2651_v50, %v968_v26  ;;  %v1049_v46 = vsub.f32 %v2655_v55, %v968_v26 }
 0x1dd   : > { %v2882_v21 = vpop.eup %2253  ;;  %2267 = vpow2.f32 %v1138_v14  ;;  %1240 = vadd.xlane.f32.xlu1 %v1239_v29 }
 0x1de   : > { %v2884_v24 = vpop.eup %2255  ;;  %v1140_v42 = vmul.f32 1.442695, %v1048_v41  ;;  %v1142_v52 = vmul.f32 1.442695, %v1049_v46 }
 0x1df   : > { %v971_v16 = vpop.xlane.xlu1 %970  ;;  %v1242_v36 = vadd.f32 %v2884_v24, %v2882_v21 }
 0x1e0   : > { %2269 = vpow2.f32 %v1140_v42  ;;  %v1050_v39 = vsub.f32 %v2657_v59, %v971_v16  ;;  %v1051_v4 = vsub.f32 %v2661_v0, %v971_v16 }
 0x1e1   : > { %v2890_v50 = vpop.eup %2257  ;;  %2271 = vpow2.f32 %v1142_v52  ;;  %1243 = vadd.xlane.f32.xlu0 %v1242_v36 }
 0x1e2   : > { %v2892_v55 = vpop.eup %2259  ;;  %v1144_v19 = vmul.f32 1.442695, %v1050_v39  ;;  %v1146_v63 = vmul.f32 1.442695, %v1051_v4 }
 0x1e3   : > { %v974_v14 = vpop.xlane.xlu0 %973  ;;  %v1245_v26 = vadd.f32 %v2892_v55, %v2890_v50 }
 0x1e4   : > { %2273 = vpow2.f32 %v1144_v19  ;;  %v1052_v29 = vsub.f32 %v2663_v2, %v974_v14  ;;  %v1053_v41 = vsub.f32 %v2667_v7, %v974_v14 }
 0x1e5   : > { %v2898_v59 = vpop.eup %2261  ;;  %2275 = vpow2.f32 %v1146_v63  ;;  %1246 = vadd.xlane.f32.xlu1 %v1245_v26 }
 0x1e6   : > { %v2900_v0 = vpop.eup %2263  ;;  %v1148_v46 = vmul.f32 1.442695, %v1052_v29  ;;  %v1150_v42 = vmul.f32 1.442695, %v1053_v41 }
 0x1e7   : > { %v977_v52 = vpop.xlane.xlu1 %976  ;;  %v1248_v16 = vadd.f32 %v2900_v0, %v2898_v59 }
 0x1e8   : > { %2277 = vpow2.f32 %v1148_v46  ;;  %v1054_v36 = vsub.f32 %v2669_v11, %v977_v52  ;;  %v1055_v39 = vsub.f32 %v2673_v17, %v977_v52 }
 0x1e9   : > { %v2906_v2 = vpop.eup %2265  ;;  %2279 = vpow2.f32 %v1150_v42  ;;  %1249 = vadd.xlane.f32.xlu0 %v1248_v16 }
 0x1ea   : > { %v2908_v7 = vpop.eup %2267  ;;  %v1152_v4 = vmul.f32 1.442695, %v1054_v36  ;;  %v1154_v19 = vmul.f32 1.442695, %v1055_v39 }
 0x1eb   : > { %v980_v63 = vpop.xlane.xlu0 %979  ;;  %v1251_v14 = vadd.f32 %v2908_v7, %v2906_v2 }
 0x1ec   : > { %2281 = vpow2.f32 %v1152_v4  ;;  %v1056_v26 = vsub.f32 %v2675_v20, %v980_v63  ;;  %v1057_v29 = vsub.f32 %v2679_v25, %v980_v63 }
 0x1ed   : > { %v2914_v11 = vpop.eup %2269  ;;  %2283 = vpow2.f32 %v1154_v19  ;;  %1252 = vadd.xlane.f32.xlu1 %v1251_v14 }
 0x1ee   : > { %v2916_v17 = vpop.eup %2271  ;;  %v1156_v41 = vmul.f32 1.442695, %v1056_v26  ;;  %v1158_v46 = vmul.f32 1.442695, %v1057_v29 }
 0x1ef   : > { %v983_v42 = vpop.xlane.xlu1 %982  ;;  %v1254_v52 = vadd.f32 %v2916_v17, %v2914_v11 }
 0x1f0   : > { %2285 = vpow2.f32 %v1156_v41  ;;  %v1058_v16 = vsub.f32 %v2681_v28, %v983_v42  ;;  %v1059_v36 = vsub.f32 %v2685_v33, %v983_v42 }
 0x1f1   : > { %v2922_v20 = vpop.eup %2273  ;;  %2287 = vpow2.f32 %v1158_v46  ;;  %1255 = vadd.xlane.f32.xlu0 %v1254_v52 }
 0x1f2   : > { %v2924_v25 = vpop.eup %2275  ;;  %v1160_v39 = vmul.f32 1.442695, %v1058_v16  ;;  %v1162_v4 = vmul.f32 1.442695, %v1059_v36 }
 0x1f3   : > { %v986_v19 = vpop.xlane.xlu0 %985  ;;  %v1257_v63 = vadd.f32 %v2924_v25, %v2922_v20 }
 0x1f4   : > { %2289 = vpow2.f32 %v1160_v39  ;;  %v1060_v14 = vsub.f32 %v2687_v37, %v986_v19  ;;  %v1061_v26 = vsub.f32 %v2691_v44, %v986_v19 }
 0x1f5   : > { %v2930_v28 = vpop.eup %2277  ;;  %2291 = vpow2.f32 %v1162_v4  ;;  %1258 = vadd.xlane.f32.xlu1 %v1257_v63 }
 0x1f6   : > { %v2932_v33 = vpop.eup %2279  ;;  %v1164_v29 = vmul.f32 1.442695, %v1060_v14  ;;  %v1166_v41 = vmul.f32 1.442695, %v1061_v26 }
 0x1f7   : > { %v989_v46 = vpop.xlane.xlu1 %988  ;;  %v1260_v42 = vadd.f32 %v2932_v33, %v2930_v28 }
 0x1f8   : > { %2293 = vpow2.f32 %v1164_v29  ;;  %v1062_v52 = vsub.f32 %v2693_v49, %v989_v46  ;;  %v1063_v16 = vsub.f32 %v2697_v56, %v989_v46 }
 0x1f9   : > { %v2938_v37 = vpop.eup %2281  ;;  %2295 = vpow2.f32 %v1166_v41  ;;  %1261 = vadd.xlane.f32.xlu0 %v1260_v42 }
 0x1fa   : > { %v2940_v44 = vpop.eup %2283  ;;  %v1168_v36 = vmul.f32 1.442695, %v1062_v52  ;;  %v1170_v39 = vmul.f32 1.442695, %v1063_v16  ;;  %v3255_v52 = vld [vmem:[#allocation2_spill] sm:$0xff] }
 0x1fb   : > { %v992_v4 = vpop.xlane.xlu0 %991  ;;  %v1263_v19 = vadd.f32 %v2940_v44, %v2938_v37 }
 0x1fc   : > { %2297 = vpow2.f32 %v1168_v36  ;;  %v1064_v63 = vsub.f32 %v2699_v61, %v992_v4  ;;  %v1065_v14 = vsub.f32 %v2703_v6, %v992_v4 }
 0x1fd   : > { %v2946_v49 = vpop.eup %2285  ;;  %2299 = vpow2.f32 %v1170_v39  ;;  %1264 = vadd.xlane.f32.xlu1 %v1263_v19 }
 0x1fe   : > { %v2948_v56 = vpop.eup %2287  ;;  %v1172_v26 = vmul.f32 1.442695, %v1064_v63  ;;  %v1174_v29 = vmul.f32 1.442695, %v1065_v14 }
 0x1ff   : > { %v995_v41 = vpop.xlane.xlu1 %994  ;;  %v1266_v46 = vadd.f32 %v2948_v56, %v2946_v49 }
 0x200   : > { %2301 = vpow2.f32 %v1172_v26  ;;  %v1066_v42 = vsub.f32 %v2705_v12, %v995_v41  ;;  %v1067_v16 = vsub.f32 %v3255_v52, %v995_v41 }
 0x201   : > { %v2954_v61 = vpop.eup %2289  ;;  %2303 = vpow2.f32 %v1174_v29  ;;  %1267 = vadd.xlane.f32.xlu0 %v1266_v46 }
 0x202   : > { %v2956_v6 = vpop.eup %2291  ;;  %v1176_v36 = vmul.f32 1.442695, %v1066_v42  ;;  %v1178_v39 = vmul.f32 1.442695, %v1067_v16 }
 0x203   : > { %v1269_v4 = vadd.f32 %v2956_v6, %v2954_v61 }
 0x204   : > { %2305 = vpow2.f32 %v1176_v36 }
 0x205   : > { %v2960_v19 = vpop.eup %2293  ;;  %2307 = vpow2.f32 %v1178_v39  ;;  %1270 = vadd.xlane.f32.xlu1 %v1269_v4 }
 0x206   : > { %3256 = vst [vmem:[#allocation2_spill] sm:$0xff] %v2960_v19  ;;  %v2962_v63 = vpop.eup %2295 }
 0x207   : > { %3257 = vst [vmem:[#allocation9_spill] sm:$0xff] %v2962_v63  ;;  %v1272_v12 = vadd.f32 %v2962_v63, %v2960_v19 }
 0x209   : > { %v2966_v14 = vpop.eup %2297  ;;  %1273 = vadd.xlane.f32.xlu0 %v1272_v12 }
 0x20a   : > { %3258 = vst [vmem:[#allocation10_spill] sm:$0xff] %v2966_v14  ;;  %v2968_v26 = vpop.eup %2299 }
 0x20b   : > { %3259 = vst [vmem:[#allocation11_spill] sm:$0xff] %v2968_v26  ;;  %v1275_v29 = vadd.f32 %v2968_v26, %v2966_v14 }
 0x20d   : > { %v2972_v41 = vpop.eup %2301  ;;  %1276 = vadd.xlane.f32.xlu1 %v1275_v29 }
 0x20e   : > { %3260 = vst [vmem:[#allocation12_spill] sm:$0xff] %v2972_v41  ;;  %v2974_v46 = vpop.eup %2303 }
 0x20f   : > { %3261 = vst [vmem:[#allocation13_spill] sm:$0xff] %v2974_v46  ;;  %v1278_v42 = vadd.f32 %v2974_v46, %v2972_v41 }
 0x211   : > { %v2978_v52 = vpop.eup %2305  ;;  %1279 = vadd.xlane.f32.xlu0 %v1278_v42 }
 0x212   : > { %3262 = vst [vmem:[#allocation14_spill] sm:$0xff] %v2978_v52  ;;  %v2980_v16 = vpop.eup %2307 }
 0x213   : > { %3263 = vst [vmem:[#allocation15_spill] sm:$0xff] %v2980_v16  ;;  %v1281_v36 = vadd.f32 %v2980_v16, %v2978_v52 }
 0x215   : > { %1282 = vadd.xlane.f32.xlu1 %v1281_v36 }
 0x242   : > { %v1214_v39 = vpop.xlane.xlu0 %1213 }
 0x243   : > { %2309 = vrcp.f32 %v1214_v39 }
 0x246   : > { %v1217_v4 = vpop.xlane.xlu1 %1216  ;;  %v998_v12 = vpop.xlane.xlu0 %997 }
 0x247   : > { %2311 = vrcp.f32 %v1217_v4  ;;  %v1068_v29 = vsub.f32 %v2744_v58, %v998_v12  ;;  %v1069_v19 = vsub.f32 %v2746_v43, %v998_v12 }
 0x249   : > { %v1180_v14 = vmul.f32 1.442695, %v1068_v29  ;;  %v1182_v41 = vmul.f32 1.442695, %v1069_v19 }
 0x24a   : > { %v1220_v46 = vpop.xlane.xlu0 %1219  ;;  %v1001_v26 = vpop.xlane.xlu1 %1000 }
 0x24b   : > { %2313 = vpow2.f32 %v1180_v14  ;;  %v1070_v42 = vsub.f32 %v2756_v35, %v1001_v26  ;;  %v1071_v63 = vsub.f32 %v2758_v30, %v1001_v26 }
 0x24c   : > { %2315 = vpow2.f32 %v1182_v41 }
 0x24d   : > { %v1184_v36 = vmul.f32 1.442695, %v1070_v42  ;;  %v1186_v52 = vmul.f32 1.442695, %v1071_v63  ;;  %2317 = vrcp.f32 %v1220_v46 }
 0x24e   : > { %v1223_v39 = vpop.xlane.xlu1 %1222  ;;  %v1004_v16 = vpop.xlane.xlu0 %1003 }
 0x24f   : > { %2319 = vpow2.f32 %v1184_v36  ;;  %v1072_v58 = vsub.f32 %v2771_v5, %v1004_v16  ;;  %v1073_v43 = vsub.f32 %v2773_v62, %v1004_v16 }
 0x250   : > { %2321 = vpow2.f32 %v1186_v52  ;;  %v2310_v14 = vpop.eup %2309 }
 0x251   : > { %2323 = vrcp.f32 %v1223_v39  ;;  %v1188_v19 = vmul.f32 1.442695, %v1072_v58  ;;  %v1190_v4 = vmul.f32 1.442695, %v1073_v43  ;;  %v1341_v5 = vmul.f32 %v2310_v14, %v2742_v45 }
 0x252   : > { %v1226_v12 = vpop.xlane.xlu0 %1225  ;;  %v1007_v35 = vpop.xlane.xlu1 %1006  ;;  %v1340_v29 = vmul.f32 %v2310_v14, %v2740_v40 }
 0x253   : > { %2325 = vpow2.f32 %v1188_v19  ;;  %v1074_v30 = vsub.f32 %v2787_v53, %v1007_v35  ;;  %v1075_v63 = vsub.f32 %v2789_v54, %v1007_v35 }
 0x254   : > { %v2312_v26 = vpop.eup %2311  ;;  %2327 = vpow2.f32 %v1190_v4 }
 0x255   : > { %v1192_v41 = vmul.f32 1.442695, %v1074_v30  ;;  %v1194_v46 = vmul.f32 1.442695, %v1075_v63  ;;  %v1343_v62 = vmul.f32 %v2312_v26, %v2754_v48  ;;  %2329 = vrcp.f32 %v1226_v12 }
 0x256   : > { %v1229_v52 = vpop.xlane.xlu1 %1228  ;;  %v1010_v16 = vpop.xlane.xlu0 %1009  ;;  %v1342_v42 = vmul.f32 %v2312_v26, %v2752_v47 }
 0x257   : > { %2331 = vpow2.f32 %v1192_v41  ;;  %v1076_v53 = vsub.f32 %v2804_v10, %v1010_v16  ;;  %v1077_v54 = vsub.f32 %v2806_v3, %v1010_v16  ;;  %v1405_v36 = vpack.c.bf16 %v1343_v62, %v1341_v5  ;;  %v3264_v16 = vld [vmem:[#allocation3_spill] sm:$0xff] }
 0x258   : > { %v2998_v39 = vpop.eup %2313  ;;  %2333 = vpow2.f32 %v1194_v46  ;;  %v1404_v58 = vpack.c.bf16 %v1342_v42, %v1340_v29  ;;  %v3265_v42 = vld [vmem:[#allocation4_spill] sm:$0xff] }
 0x259   : > { %v3000_v45 = vpop.eup %2315  ;;  %2335 = vrcp.f32 %v1229_v52  ;;  %v1196_v48 = vmul.f32 1.442695, %v1076_v53  ;;  %v1198_v43 = vmul.f32 1.442695, %v1077_v54  ;;  %1596 = vmatprep.mubr.bf16.mxu1 %v1405_v36 }
 0x25a   : > { %1597 = vmatmul.mubr.bf16.vlgmr.msra.gmra.mxu1 %v1404_v58  ;;  %v1232_v40 = vpop.xlane.xlu0 %1231  ;;  %v1013_v19 = vpop.xlane.xlu1 %1012  ;;  %v1284_v47 = vadd.f32 %v3000_v45, %v2998_v39 }
 0x25b   : > { %v2318_v10 = vpop.eup %2317  ;;  %2337 = vpow2.f32 %v1196_v48  ;;  %v1078_v3 = vsub.f32 %v2819_v60, %v1013_v19  ;;  %v1079_v4 = vsub.f32 %v2821_v23, %v1013_v19 }
 0x25c   : > { %v3006_v14 = vpop.eup %2319  ;;  %2339 = vpow2.f32 %v1198_v43  ;;  %1285 = vadd.xlane.f32.xlu0 %v1284_v47  ;;  %v1345_v5 = vmul.f32 %v2318_v10, %v2768_v51  ;;  %v1344_v29 = vmul.f32 %v2318_v10, %v3264_v16 }
 0x25d   : > { %v3008_v12 = vpop.eup %2321  ;;  %v1200_v35 = vmul.f32 1.442695, %v1078_v3  ;;  %v1202_v30 = vmul.f32 1.442695, %v1079_v4  ;;  %2341 = vrcp.f32 %v1232_v40 }
 0x25e   : > { %v2324_v63 = vpop.eup %2323  ;;  %v1235_v26 = vpop.xlane.xlu1 %1234  ;;  %v1287_v46 = vadd.f32 %v3008_v12, %v3006_v14 }
 0x25f   : > { %v1016_v41 = vpop.xlane.xlu0 %1015  ;;  %2343 = vpow2.f32 %v1200_v35  ;;  %v1347_v62 = vmul.f32 %v2324_v63, %v2784_v38  ;;  %v1346_v53 = vmul.f32 %v2324_v63, %v3265_v42 }
 0x260   : > { %v1080_v60 = vsub.f32 %v2835_v22, %v1016_v41  ;;  %v1081_v23 = vsub.f32 %v2837_v8, %v1016_v41  ;;  %v3016_v52 = vpop.eup %2325  ;;  %2345 = vpow2.f32 %v1202_v30  ;;  %1288 = vadd.xlane.f32.xlu1 %v1287_v46  ;;  %v3267_v46 = vld [vmem:[#allocation6_spill] sm:$0xff] }
 0x261   : > { %v3020_v54 = vpop.eup %2327  ;;  %2347 = vrcp.f32 %v1235_v26  ;;  %v1407_v58 = vpack.c.bf16 %v1347_v62, %v1345_v5  ;;  %v1406_v48 = vpack.c.bf16 %v1346_v53, %v1344_v29 }
 0x262   : > { %v1204_v36 = vmul.f32 1.442695, %v1080_v60  ;;  %v1206_v51 = vmul.f32 1.442695, %v1081_v23  ;;  %v1019_v22 = vpop.xlane.xlu1 %1018  ;;  %v1290_v8 = vadd.f32 %v3020_v54, %v3016_v52  ;;  %v2330_v38 = vpop.eup %2329 }
 0x263   : > { %1604 = vmatprep.mubr.bf16.mxu1 %v1407_v58  ;;  %v1238_v43 = vpop.xlane.xlu0 %1237  ;;  %v1082_v40 = vsub.f32 %v2851_v32, %v1019_v22  ;;  %v1083_v19 = vsub.f32 %v2853_v13, %v1019_v22  ;;  %v1349_v26 = vmul.f32 %v2330_v38, %v2800_v18  ;;  %v3266_v13 = vld [vmem:[#allocation5_spill] sm:$0xff] }
 0x264   : > { %2349 = vpow2.f32 %v1204_v36  ;;  %v3026_v47 = vpop.eup %2331  ;;  %1605 = vmatmul.mubr.bf16.gmra.mxu1 %v1406_v48  ;;  %1291 = vadd.xlane.f32.xlu0 %v1290_v8  ;;  %v1348_v41 = vmul.f32 %v2330_v38, %v3266_v13  ;;  %v3268_v48 = vld [vmem:[#allocation8_spill] sm:$0xff]  ;;  %v3269_v38 = vld [vmem:[#allocation7_spill] sm:$0xff] }
 0x265   : > { %2351 = vpow2.f32 %v1206_v51  ;;  %v3028_v10 = vpop.eup %2333  ;;  %v1208_v3 = vmul.f32 1.442695, %v1082_v40  ;;  %v1210_v4 = vmul.f32 1.442695, %v1083_v19 }
 0x266   : > { %v2336_v35 = vpop.eup %2335  ;;  %2353 = vrcp.f32 %v1238_v43  ;;  %v1241_v30 = vpop.xlane.xlu1 %1240  ;;  %v1293_v63 = vadd.f32 %v3028_v10, %v3026_v47 }
 0x267   : > { %2355 = vpow2.f32 %v1208_v3  ;;  %v1351_v32 = vmul.f32 %v2336_v35, %v2817_v15  ;;  %v1350_v5 = vmul.f32 %v2336_v35, %v3267_v46 }
 0x268   : > { %v3036_v60 = vpop.eup %2337  ;;  %2357 = vpow2.f32 %v1210_v4  ;;  %1294 = vadd.xlane.f32.xlu1 %v1293_v63 }
 0x269   : > { %v3038_v23 = vpop.eup %2339  ;;  %2359 = vrcp.f32 %v1241_v30  ;;  %v1409_v62 = vpack.c.bf16 %v1351_v32, %v1349_v26  ;;  %v1408_v16 = vpack.c.bf16 %v1350_v5, %v1348_v41 }
 0x26a   : > { %v1244_v29 = vpop.xlane.xlu0 %1243  ;;  %v1296_v18 = vadd.f32 %v3038_v23, %v3036_v60  ;;  %v2342_v42 = vpop.eup %2341 }
 0x26b   : > { %1612 = vmatprep.mubr.bf16.mxu1 %v1409_v62  ;;  %2361 = vrcp.f32 %v1244_v29  ;;  %v1353_v22 = vmul.f32 %v2342_v42, %v3268_v48  ;;  %v1352_v43 = vmul.f32 %v2342_v42, %v3269_v38 }
 0x26c   : > { %v3042_v15 = vpop.eup %2343  ;;  %1613 = vmatmul.mubr.bf16.gmra.mxu1 %v1408_v16  ;;  %1297 = vadd.xlane.f32.xlu0 %v1296_v18 }
 0x26d   : > { %v3044_v53 = vpop.eup %2345 }
 0x26e   : > { %v2348_v36 = vpop.eup %2347  ;;  %v1247_v51 = vpop.xlane.xlu1 %1246  ;;  %v1299_v58 = vadd.f32 %v3044_v53, %v3042_v15 }
 0x26f   : > { %2363 = vrcp.f32 %v1247_v51  ;;  %v1355_v8 = vmul.f32 %v2348_v36, %v2848_v1  ;;  %v1354_v40 = vmul.f32 %v2348_v36, %v2846_v27 }
 0x270   : > { %1300 = vadd.xlane.f32.xlu1 %v1299_v58 }
 0x271   : > { %v3052_v19 = vpop.eup %2349  ;;  %v1411_v4 = vpack.c.bf16 %v1355_v8, %v1353_v22  ;;  %v1410_v35 = vpack.c.bf16 %v1354_v40, %v1352_v43 }
 0x272   : > { %v3054_v3 = vpop.eup %2351  ;;  %v1250_v30 = vpop.xlane.xlu0 %1249 }
 0x273   : > { %v1302_v63 = vadd.f32 %v3054_v3, %v3052_v19  ;;  %v2354_v26 = vpop.eup %2353  ;;  %1620 = vmatprep.mubr.bf16.mxu1 %v1411_v4  ;;  %2365 = vrcp.f32 %v1250_v30 }
 0x274   : > { %v3058_v32 = vpop.eup %2355  ;;  %1621 = vmatmul.mubr.bf16.gmra.mxu1 %v1410_v35  ;;  %v1357_v46 = vmul.f32 %v2354_v26, %v2864_v9  ;;  %v1356_v62 = vmul.f32 %v2354_v26, %v2862_v57 }
 0x275   : > { %1303 = vadd.xlane.f32.xlu0 %v1302_v63  ;;  %v3060_v1 = vpop.eup %2357 }
 0x276   : > { %v2360_v27 = vpop.eup %2359  ;;  %v1253_v13 = vpop.xlane.xlu1 %1252  ;;  %v1305_v41 = vadd.f32 %v3060_v1, %v3058_v32 }
 0x277   : > { %2367 = vrcp.f32 %v1253_v13  ;;  %v1359_v5 = vmul.f32 %v2360_v27, %v2876_v34  ;;  %v1358_v16 = vmul.f32 %v2360_v27, %v2874_v31 }
 0x278   : > { %1306 = vadd.xlane.f32.xlu1 %v1305_v41  ;;  %v2362_v42 = vpop.eup %2361 }
 0x279   : > { %v1413_v29 = vpack.c.bf16 %v1359_v5, %v1357_v46  ;;  %v1412_v18 = vpack.c.bf16 %v1358_v16, %v1356_v62  ;;  %v1361_v58 = vmul.f32 %v2362_v42, %v2884_v24  ;;  %v1360_v57 = vmul.f32 %v2362_v42, %v2882_v21 }
 0x27a   : > { %v1256_v36 = vpop.xlane.xlu0 %1255 }
 0x27b   : > { %1628 = vmatprep.mubr.bf16.mxu1 %v1413_v29  ;;  %2369 = vrcp.f32 %v1256_v36 }
 0x27c   : > { %v2364_v51 = vpop.eup %2363  ;;  %1629 = vmatmul.mubr.bf16.gmra.mxu1 %v1412_v18 }
 0x27d   : > { %v1363_v9 = vmul.f32 %v2364_v51, %v2892_v55  ;;  %v1362_v48 = vmul.f32 %v2364_v51, %v2890_v50 }
 0x27e   : > { %v1259_v34 = vpop.xlane.xlu1 %1258 }
 0x27f   : > { %2371 = vrcp.f32 %v1259_v34  ;;  %v1415_v31 = vpack.c.bf16 %v1363_v9, %v1361_v58  ;;  %v1414_v22 = vpack.c.bf16 %v1362_v48, %v1360_v57 }
 0x280   : > { %v2366_v8 = vpop.eup %2365 }
 0x281   : > { %1636 = vmatprep.mubr.bf16.mxu1 %v1415_v31  ;;  %v1365_v40 = vmul.f32 %v2366_v8, %v2900_v0  ;;  %v1364_v50 = vmul.f32 %v2366_v8, %v2898_v59  ;;  %v3270_v31 = vld [vmem:[#allocation9_spill] sm:$0xff]  ;;  %v3271_v8 = vld [vmem:[#allocation11_spill] sm:$0xff] }
 0x282   : > { %v1262_v38 = vpop.xlane.xlu0 %1261 }
 0x283   : > { %2373 = vrcp.f32 %v1262_v38 }
 0x284   : > { %v2368_v43 = vpop.eup %2367  ;;  %1637 = vmatmul.mubr.bf16.gmra.mxu1 %v1414_v22 }
 0x285   : > { %v1367_v24 = vmul.f32 %v2368_v43, %v2908_v7  ;;  %v1366_v55 = vmul.f32 %v2368_v43, %v2906_v2  ;;  %v3272_v43 = vld [vmem:[#allocation10_spill] sm:$0xff] }
 0x286   : > { %v1265_v4 = vpop.xlane.xlu1 %1264 }
 0x287   : > { %2375 = vrcp.f32 %v1265_v4  ;;  %v1417_v21 = vpack.c.bf16 %v1367_v24, %v1365_v40  ;;  %v1416_v35 = vpack.c.bf16 %v1366_v55, %v1364_v50  ;;  %v3273_v40 = vld [vmem:[#allocation2_spill] sm:$0xff]  ;;  %v3274_v4 = vld [vmem:[#allocation13_spill] sm:$0xff] }
 0x288   : > { %v2370_v30 = vpop.eup %2369 }
 0x289   : > { %1644 = vmatprep.mubr.bf16.mxu1 %v1417_v21  ;;  %v1369_v27 = vmul.f32 %v2370_v30, %v2916_v17  ;;  %v1368_v2 = vmul.f32 %v2370_v30, %v2914_v11  ;;  %v3275_v21 = vld [vmem:[#allocation15_spill] sm:$0xff]  ;;  %v3276_v30 = vld [vmem:[#allocation14_spill] sm:$0xff] }
 0x28a   : > { %v1268_v63 = vpop.xlane.xlu0 %1267 }
 0x28b   : > { %2377 = vrcp.f32 %v1268_v63 }
 0x28c   : > { %v2372_v26 = vpop.eup %2371  ;;  %1645 = vmatmul.mubr.bf16.gmra.mxu1 %v1416_v35 }
 0x28d   : > { %v1371_v0 = vmul.f32 %v2372_v26, %v2924_v25  ;;  %v1370_v7 = vmul.f32 %v2372_v26, %v2922_v20  ;;  %v3277_v26 = vld [vmem:[#allocation12_spill] sm:$0xff] }
 0x28e   : > { %v1271_v13 = vpop.xlane.xlu1 %1270 }
 0x28f   : > { %2379 = vrcp.f32 %v1271_v13  ;;  %v1419_v59 = vpack.c.bf16 %v1371_v0, %v1369_v27  ;;  %v1418_v41 = vpack.c.bf16 %v1370_v7, %v1368_v2 }
 0x290   : > { %v2374_v46 = vpop.eup %2373 }
 0x291   : > { %1652 = vmatprep.mubr.bf16.mxu1 %v1419_v59  ;;  %v1373_v16 = vmul.f32 %v2374_v46, %v2932_v33  ;;  %v1372_v20 = vmul.f32 %v2374_v46, %v2930_v28 }
 0x292   : > { %v1274_v5 = vpop.xlane.xlu0 %1273 }
 0x293   : > { %2381 = vrcp.f32 %v1274_v5 }
 0x294   : > { %v2376_v62 = vpop.eup %2375  ;;  %1653 = vmatmul.mubr.bf16.gmra.mxu1 %v1418_v41 }
 0x295   : > { %v1375_v17 = vmul.f32 %v2376_v62, %v2940_v44  ;;  %v1374_v25 = vmul.f32 %v2376_v62, %v2938_v37 }
 0x296   : > { %v1277_v29 = vpop.xlane.xlu1 %1276 }
 0x297   : > { %2383 = vrcp.f32 %v1277_v29  ;;  %v1421_v11 = vpack.c.bf16 %v1375_v17, %v1373_v16  ;;  %v1420_v18 = vpack.c.bf16 %v1374_v25, %v1372_v20 }
 0x298   : > { %v2378_v42 = vpop.eup %2377 }
 0x299   : > { %1660 = vmatprep.mubr.bf16.mxu1 %v1421_v11  ;;  %v1377_v58 = vmul.f32 %v2378_v42, %v2948_v56  ;;  %v1376_v37 = vmul.f32 %v2378_v42, %v2946_v49 }
 0x29a   : > { %v1280_v36 = vpop.xlane.xlu0 %1279 }
 0x29b   : > { %2385 = vrcp.f32 %v1280_v36 }
 0x29c   : > { %v2380_v51 = vpop.eup %2379  ;;  %1661 = vmatmul.mubr.bf16.gmra.mxu1 %v1420_v18 }
 0x29d   : > { %v1379_v33 = vmul.f32 %v2380_v51, %v2956_v6  ;;  %v1378_v44 = vmul.f32 %v2380_v51, %v2954_v61 }
 0x29e   : > { %v1283_v9 = vpop.xlane.xlu1 %1282 }
 0x29f   : > { %2387 = vrcp.f32 %v1283_v9  ;;  %v1423_v28 = vpack.c.bf16 %v1379_v33, %v1377_v58  ;;  %v1422_v48 = vpack.c.bf16 %v1378_v44, %v1376_v37 }
 0x2a0   : > { %v2382_v34 = vpop.eup %2381 }
 0x2a1   : > { %1668 = vmatprep.mubr.bf16.mxu1 %v1423_v28  ;;  %v1381_v22 = vmul.f32 %v2382_v34, %v3270_v31  ;;  %v1380_v6 = vmul.f32 %v2382_v34, %v3273_v40 }
 0x2a4   : > { %v2384_v57 = vpop.eup %2383  ;;  %1669 = vmatmul.mubr.bf16.gmra.mxu1 %v1422_v48 }
 0x2a5   : > { %v1383_v38 = vmul.f32 %v2384_v57, %v3271_v8  ;;  %v1382_v56 = vmul.f32 %v2384_v57, %v3272_v43  ;;  %v1437_v43 = vld [vmem:[%s3116_s6 + $0x8] sm:$0xff] }
 0x2a7   : > { %v1425_v24 = vpack.c.bf16 %v1383_v38, %v1381_v22  ;;  %v1424_v61 = vpack.c.bf16 %v1382_v56, %v1380_v6 }
 0x2a8   : > { %v2386_v55 = vpop.eup %2385 }
 0x2a9   : > { %1676 = vmatprep.mubr.bf16.mxu1 %v1425_v24  ;;  %v1385_v50 = vmul.f32 %v2386_v55, %v3274_v4  ;;  %v1384_v27 = vmul.f32 %v2386_v55, %v3277_v26 }
 0x2ac   : > { %v2388_v49 = vpop.eup %2387  ;;  %1677 = vmatmul.mubr.bf16.gmra.mxu1 %v1424_v61  ;;  %v1438_v61 = vld [vmem:[%s3116_s6 + $0x10] sm:$0xff] }
 0x2ad   : > { %v1387_v35 = vmul.f32 %v2388_v49, %v3275_v21  ;;  %v1386_v63 = vmul.f32 %v2388_v49, %v3276_v30  ;;  %v1439_v21 = vld [vmem:[%s3116_s6 + $0x18] sm:$0xff] }
 0x2af   : > { %v1427_v0 = vpack.c.bf16 %v1387_v35, %v1385_v50  ;;  %v1426_v7 = vpack.c.bf16 %v1386_v63, %v1384_v27  ;;  %v1440_v27 = vld [vmem:[%s3116_s6 + $0x20] sm:$0xff] }
 0x2b1   : > { %1684 = vmatprep.mubr.bf16.mxu1 %v1427_v0 }
 0x2b4   : > { %1685 = vmatmul.mubr.bf16.gmra.mxu1 %v1426_v7 }
 0x2e5   : > { %v1286_v13 = vpop.xlane.xlu0 %1285 }
 0x2e6   : > { %2389 = vrcp.f32 %v1286_v13 }
 0x2e9   : > { %v1289_v2 = vpop.xlane.xlu1 %1288 }
 0x2ea   : > { %2391 = vrcp.f32 %v1289_v2 }
 0x2ed   : > { %v1292_v59 = vpop.xlane.xlu0 %1291 }
 0x2ee   : > { %2393 = vrcp.f32 %v1292_v59  ;;  %v1441_v59 = vld [vmem:[%s3116_s6 + $0x28] sm:$0xff] }
 0x2f1   : > { %v1295_v41 = vpop.xlane.xlu1 %1294 }
 0x2f2   : > { %2395 = vrcp.f32 %v1295_v41 }
 0x2f3   : > { %v2390_v46 = vpop.eup %2389 }
 0x2f4   : > { %v1389_v16 = vmul.f32 %v2390_v46, %v3000_v45  ;;  %v1388_v25 = vmul.f32 %v2390_v46, %v2998_v39 }
 0x2f5   : > { %v1298_v5 = vpop.xlane.xlu0 %1297 }
 0x2f6   : > { %2397 = vrcp.f32 %v1298_v5 }
 0x2f7   : > { %v2392_v62 = vpop.eup %2391 }
 0x2f8   : > { %v1391_v17 = vmul.f32 %v2392_v62, %v3008_v12  ;;  %v1390_v29 = vmul.f32 %v2392_v62, %v3006_v14 }
 0x2f9   : > { %v1301_v20 = vpop.xlane.xlu1 %1300 }
 0x2fa   : > { %2399 = vrcp.f32 %v1301_v20  ;;  %v1429_v11 = vpack.c.bf16 %v1391_v17, %v1389_v16  ;;  %v1428_v18 = vpack.c.bf16 %v1390_v29, %v1388_v25  ;;  %v1442_v16 = vld [vmem:[%s3116_s6 + $0x30] sm:$0xff] }
 0x2fb   : > { %v2394_v42 = vpop.eup %2393 }
 0x2fc   : > { %1692 = vmatprep.mubr.bf16.mxu1 %v1429_v11  ;;  %v1393_v58 = vmul.f32 %v2394_v42, %v3020_v54  ;;  %v1392_v12 = vmul.f32 %v2394_v42, %v3016_v52  ;;  %v1443_v11 = vld [vmem:[%s3116_s6 + $0x38] sm:$0xff] }
 0x2fd   : > { %1693 = vmatmul.mubr.bf16.gmra.mxu1 %v1428_v18 }
 0x2fe   : > { %v1304_v36 = vpop.xlane.xlu0 %1303 }
 0x2ff   : > { %v2396_v51 = vpop.eup %2395  ;;  %2401 = vrcp.f32 %v1304_v36 }
 0x300   : > { %v1395_v45 = vmul.f32 %v2396_v51, %v3028_v10  ;;  %v1394_v39 = vmul.f32 %v2396_v51, %v3026_v47 }
 0x301   : > { %v1307_v33 = vpop.xlane.xlu1 %1306 }
 0x302   : > { %2403 = vrcp.f32 %v1307_v33  ;;  %v1431_v14 = vpack.c.bf16 %v1395_v45, %v1393_v58  ;;  %v1430_v44 = vpack.c.bf16 %v1394_v39, %v1392_v12  ;;  %v1444_v58 = vld [vmem:[%s3116_s6 + $0x40] sm:$0xff] }
 0x303   : > { %v2398_v9 = vpop.eup %2397 }
 0x304   : > { %1700 = vmatprep.mubr.bf16.mxu1 %v1431_v14  ;;  %v1397_v28 = vmul.f32 %v2398_v9, %v3038_v23  ;;  %v1396_v54 = vmul.f32 %v2398_v9, %v3036_v60  ;;  %v1445_v14 = vld [vmem:[%s3116_s6 + $0x48] sm:$0xff] }
 0x305   : > { %1701 = vmatmul.mubr.bf16.gmra.mxu1 %v1430_v44 }
 0x307   : > { %v2400_v37 = vpop.eup %2399 }
 0x308   : > { %v1399_v48 = vmul.f32 %v2400_v37, %v3044_v53  ;;  %v1398_v10 = vmul.f32 %v2400_v37, %v3042_v15  ;;  %v1436_v15 = vld [vmem:[%s3116_s6] sm:$0xff] }
 0x30a   : > { %v1433_v52 = vpack.c.bf16 %v1399_v48, %v1397_v28  ;;  %v1432_v34 = vpack.c.bf16 %v1398_v10, %v1396_v54  ;;  %v1446_v48 = vld [vmem:[%s3116_s6 + $0x50] sm:$0xff] }
 0x30c   : > { %1708 = vmatprep.mubr.bf16.mxu1 %v1433_v52  ;;  %v2402_v47 = vpop.eup %2401 }
 0x30d   : > { %1709 = vmatmul.mubr.bf16.gmra.mxu1 %v1432_v34  ;;  %v1401_v31 = vmul.f32 %v2402_v47, %v3054_v3  ;;  %v1400_v8 = vmul.f32 %v2402_v47, %v3052_v19  ;;  %v1447_v47 = vld [vmem:[%s3116_s6 + $0x58] sm:$0xff] }
 0x30f   : > { %v2404_v57 = vpop.eup %2403 }
 0x310   : > { %v1403_v22 = vmul.f32 %v2404_v57, %v3060_v1  ;;  %v1402_v23 = vmul.f32 %v2404_v57, %v3058_v32 }
 0x312   : > { %v1435_v53 = vpack.c.bf16 %v1403_v22, %v1401_v31  ;;  %v1434_v38 = vpack.c.bf16 %v1402_v23, %v1400_v8  ;;  %v1448_v23 = vld [vmem:[%s3116_s6 + $0x60] sm:$0xff] }
 0x314   : > { %1716 = vmatprep.mubr.bf16.mxu1 %v1435_v53 }
 0x315   : > { %1717 = vmatmul.mubr.bf16.gmra.mxu1 %v1434_v38 }
 0x31a   : > { %v2037_v60 = vpop.f32.mrf.mxu1 }
 0x31c   : > { %v2038_v3 = vpop.f32.mrf.mxu1 }
 0x31d   : > { %v2039_v1 = vadd.f32 %v2038_v3, %v2037_v60  ;;  %v1449_v3 = vld [vmem:[%s3116_s6 + $0x68] sm:$0xff] }
 0x31e   : > { %v2040_v19 = vpop.f32.mrf.mxu1 }
 0x31f   : > { %v1599_v32 = vadd.f32 %v2039_v1, %v1436_v15 }
 0x320   : > { %v2041_v56 = vpop.f32.mrf.mxu1 }
 0x321   : > { %1726 = vst.msk [vmem:[%s3122_s9] sm:$0xff] %vm1725_vm1, %v1599_v32  ;;  %v2042_v40 = vadd.f32 %v2041_v56, %v2040_v19  ;;  %v1450_v56 = vld [vmem:[%s3116_s6 + $0x70] sm:$0xff] }
 0x323   : > { %v1602_v6 = vadd.f32 %v2042_v40, %v1437_v43 }
 0x324   : > { %v2043_v24 = vpop.f32.mrf.mxu1 }
 0x325   : > { %1727 = vst.msk [vmem:[%s3122_s9 + $0x8] sm:$0xff] %vm1725_vm1, %v1602_v6 }
 0x326   : > { %v2044_v55 = vpop.f32.mrf.mxu1 }
 0x327   : > { %v2045_v49 = vadd.f32 %v2044_v55, %v2043_v24  ;;  %v1451_v55 = vld [vmem:[%s3116_s6 + $0x78] sm:$0xff] }
 0x328   : > { %v2046_v4 = vpop.f32.mrf.mxu1 }
 0x329   : > { %v1607_v50 = vadd.f32 %v2045_v49, %v1438_v61 }
 0x32a   : > { %v2047_v35 = vpop.f32.mrf.mxu1 }
 0x32b   : > { %1728 = vst.msk [vmem:[%s3122_s9 + $0x10] sm:$0xff] %vm1725_vm1, %v1607_v50  ;;  %v2048_v30 = vadd.f32 %v2047_v35, %v2046_v4  ;;  %v1452_v35 = vld [vmem:[%s3116_s6 + $0x80] sm:$0xff] }
 0x32c   : > { %v2049_v63 = vpop.f32.mrf.mxu1 }
 0x32d   : > { %v1610_v26 = vadd.f32 %v2048_v30, %v1439_v21 }
 0x32e   : > { %v2050_v0 = vpop.f32.mrf.mxu1 }
 0x32f   : > { %1729 = vst.msk [vmem:[%s3122_s9 + $0x18] sm:$0xff] %vm1725_vm1, %v1610_v26  ;;  %v2051_v7 = vadd.f32 %v2050_v0, %v2049_v63  ;;  %v1453_v0 = vld [vmem:[%s3116_s6 + $0x88] sm:$0xff] }
 0x330   : > { %v2052_v13 = vpop.f32.mrf.mxu1 }
 0x331   : > { %v1615_v2 = vadd.f32 %v2051_v7, %v1440_v27 }
 0x332   : > { %v2053_v41 = vpop.f32.mrf.mxu1 }
 0x333   : > { %1730 = vst.msk [vmem:[%s3122_s9 + $0x20] sm:$0xff] %vm1725_vm1, %v1615_v2  ;;  %v2054_v46 = vadd.f32 %v2053_v41, %v2052_v13  ;;  %v1454_v41 = vld [vmem:[%s3116_s6 + $0x90] sm:$0xff] }
 0x334   : > { %v2055_v5 = vpop.f32.mrf.mxu1 }
 0x335   : > { %v1618_v62 = vadd.f32 %v2054_v46, %v1441_v59 }
 0x336   : > { %v2056_v17 = vpop.f32.mrf.mxu1 }
 0x337   : > { %1731 = vst.msk [vmem:[%s3122_s9 + $0x28] sm:$0xff] %vm1725_vm1, %v1618_v62  ;;  %v2057_v25 = vadd.f32 %v2056_v17, %v2055_v5  ;;  %v1455_v17 = vld [vmem:[%s3116_s6 + $0x98] sm:$0xff] }
 0x338   : > { %v2058_v29 = vpop.f32.mrf.mxu1 }
 0x339   : > { %v1623_v20 = vadd.f32 %v2057_v25, %v1442_v16 }
 0x33a   : > { %v2059_v18 = vpop.f32.mrf.mxu1 }
 0x33b   : > { %1732 = vst.msk [vmem:[%s3122_s9 + $0x30] sm:$0xff] %vm1725_vm1, %v1623_v20  ;;  %v2060_v42 = vadd.f32 %v2059_v18, %v2058_v29  ;;  %v1456_v18 = vld [vmem:[%s3116_s6 + $0xa0] sm:$0xff] }
 0x33c   : > { %v2061_v36 = vpop.f32.mrf.mxu1 }
 0x33d   : > { %v1626_v51 = vadd.f32 %v2060_v42, %v1443_v11 }
 0x33e   : > { %v2062_v45 = vpop.f32.mrf.mxu1 }
 0x33f   : > { %1733 = vst.msk [vmem:[%s3122_s9 + $0x38] sm:$0xff] %vm1725_vm1, %v1626_v51  ;;  %v2063_v12 = vadd.f32 %v2062_v45, %v2061_v36  ;;  %v1457_v45 = vld [vmem:[%s3116_s6 + $0xa8] sm:$0xff] }
 0x340   : > { %v2064_v39 = vpop.f32.mrf.mxu1 }
 0x341   : > { %v1631_v33 = vadd.f32 %v2063_v12, %v1444_v58 }
 0x342   : > { %v2065_v44 = vpop.f32.mrf.mxu1 }
 0x343   : > { %1734 = vst.msk [vmem:[%s3122_s9 + $0x40] sm:$0xff] %vm1725_vm1, %v1631_v33  ;;  %v2066_v9 = vadd.f32 %v2065_v44, %v2064_v39  ;;  %v1458_v44 = vld [vmem:[%s3116_s6 + $0xb0] sm:$0xff] }
 0x344   : > { %v2067_v37 = vpop.f32.mrf.mxu1 }
 0x345   : > { %v1634_v28 = vadd.f32 %v2066_v9, %v1445_v14 }
 0x346   : > { %v2068_v54 = vpop.f32.mrf.mxu1 }
 0x347   : > { %1735 = vst.msk [vmem:[%s3122_s9 + $0x48] sm:$0xff] %vm1725_vm1, %v1634_v28  ;;  %v2069_v10 = vadd.f32 %v2068_v54, %v2067_v37  ;;  %v1459_v54 = vld [vmem:[%s3116_s6 + $0xb8] sm:$0xff] }
 0x348   : > { %v2070_v52 = vpop.f32.mrf.mxu1 }
 0x349   : > { %v1639_v34 = vadd.f32 %v2069_v10, %v1446_v48 }
 0x34a   : > { %v2071_v57 = vpop.f32.mrf.mxu1 }
 0x34b   : > { %1736 = vst.msk [vmem:[%s3122_s9 + $0x50] sm:$0xff] %vm1725_vm1, %v1639_v34  ;;  %v2072_v31 = vadd.f32 %v2071_v57, %v2070_v52  ;;  %v1460_v57 = vld [vmem:[%s3116_s6 + $0xc0] sm:$0xff] }
 0x34c   : > { %v2073_v22 = vpop.f32.mrf.mxu1 }
 0x34d   : > { %v1642_v8 = vadd.f32 %v2072_v31, %v1447_v47 }
 0x34e   : > { %v2074_v53 = vpop.f32.mrf.mxu1 }
 0x34f   : > { %1737 = vst.msk [vmem:[%s3122_s9 + $0x58] sm:$0xff] %vm1725_vm1, %v1642_v8  ;;  %v2075_v38 = vadd.f32 %v2074_v53, %v2073_v22  ;;  %v1461_v53 = vld [vmem:[%s3116_s6 + $0xc8] sm:$0xff] }
 0x350   : > { %v2076_v60 = vpop.f32.mrf.mxu1 }
 0x351   : > { %v1647_v15 = vadd.f32 %v2075_v38, %v1448_v23 }
 0x352   : > { %v2077_v1 = vpop.f32.mrf.mxu1 }
 0x353   : > { %1738 = vst.msk [vmem:[%s3122_s9 + $0x60] sm:$0xff] %vm1725_vm1, %v1647_v15  ;;  %v2078_v19 = vadd.f32 %v2077_v1, %v2076_v60  ;;  %v1462_v1 = vld [vmem:[%s3116_s6 + $0xd0] sm:$0xff] }
 0x354   : > { %v2079_v32 = vpop.f32.mrf.mxu1 }
 0x355   : > { %v1650_v43 = vadd.f32 %v2078_v19, %v1449_v3 }
 0x356   : > { %v2080_v40 = vpop.f32.mrf.mxu1 }
 0x357   : > { %1739 = vst.msk [vmem:[%s3122_s9 + $0x68] sm:$0xff] %vm1725_vm1, %v1650_v43  ;;  %v2081_v6 = vadd.f32 %v2080_v40, %v2079_v32  ;;  %v1463_v40 = vld [vmem:[%s3116_s6 + $0xd8] sm:$0xff] }
 0x358   : > { %v2082_v24 = vpop.f32.mrf.mxu1 }
 0x359   : > { %v1655_v61 = vadd.f32 %v2081_v6, %v1450_v56 }
 0x35a   : > { %v2083_v49 = vpop.f32.mrf.mxu1 }
 0x35b   : > { %1740 = vst.msk [vmem:[%s3122_s9 + $0x70] sm:$0xff] %vm1725_vm1, %v1655_v61  ;;  %v2084_v4 = vadd.f32 %v2083_v49, %v2082_v24  ;;  %v1464_v49 = vld [vmem:[%s3116_s6 + $0xe0] sm:$0xff] }
 0x35c   : > { %v2085_v50 = vpop.f32.mrf.mxu1 }
 0x35d   : > { %v1658_v21 = vadd.f32 %v2084_v4, %v1451_v55 }
 0x35e   : > { %v2086_v30 = vpop.f32.mrf.mxu1 }
 0x35f   : > { %1741 = vst.msk [vmem:[%s3122_s9 + $0x78] sm:$0xff] %vm1725_vm1, %v1658_v21  ;;  %v2087_v63 = vadd.f32 %v2086_v30, %v2085_v50  ;;  %v1465_v30 = vld [vmem:[%s3116_s6 + $0xe8] sm:$0xff] }
 0x360   : > { %v2088_v26 = vpop.f32.mrf.mxu1 }
 0x361   : > { %v1663_v27 = vadd.f32 %v2087_v63, %v1452_v35 }
 0x362   : > { %v2089_v7 = vpop.f32.mrf.mxu1 }
 0x363   : > { %1742 = vst.msk [vmem:[%s3122_s9 + $0x80] sm:$0xff] %vm1725_vm1, %v1663_v27  ;;  %v2090_v13 = vadd.f32 %v2089_v7, %v2088_v26  ;;  %v1466_v7 = vld [vmem:[%s3116_s6 + $0xf0] sm:$0xff] }
 0x364   : > { %v2091_v2 = vpop.f32.mrf.mxu1 }
 0x365   : > { %v1666_v59 = vadd.f32 %v2090_v13, %v1453_v0 }
 0x366   : > { %v2092_v46 = vpop.f32.mrf.mxu1 }
 0x367   : > { %1743 = vst.msk [vmem:[%s3122_s9 + $0x88] sm:$0xff] %vm1725_vm1, %v1666_v59  ;;  %v2093_v5 = vadd.f32 %v2092_v46, %v2091_v2  ;;  %v1467_v46 = vld [vmem:[%s3116_s6 + $0xf8] sm:$0xff] }
 0x368   : > { %v2094_v62 = vpop.f32.mrf.mxu1 }
 0x369   : > { %v1671_v16 = vadd.f32 %v2093_v5, %v1454_v41 }
 0x36a   : > { %v2095_v25 = vpop.f32.mrf.mxu1 }
 0x36b   : > { %1744 = vst.msk [vmem:[%s3122_s9 + $0x90] sm:$0xff] %vm1725_vm1, %v1671_v16  ;;  %v2096_v29 = vadd.f32 %v2095_v25, %v2094_v62 }
 0x36c   : > { %v2097_v20 = vpop.f32.mrf.mxu1 }
 0x36d   : > { %v1674_v11 = vadd.f32 %v2096_v29, %v1455_v17 }
 0x36e   : > { %v2098_v42 = vpop.f32.mrf.mxu1 }
 0x36f   : > { %1745 = vst.msk [vmem:[%s3122_s9 + $0x98] sm:$0xff] %vm1725_vm1, %v1674_v11  ;;  %v2099_v36 = vadd.f32 %v2098_v42, %v2097_v20 }
 0x370   : > { %v2100_v51 = vpop.f32.mrf.mxu1 }
 0x371   : > { %v1679_v58 = vadd.f32 %v2099_v36, %v1456_v18 }
 0x372   : > { %v2101_v12 = vpop.f32.mrf.mxu1 }
 0x373   : > { %1746 = vst.msk [vmem:[%s3122_s9 + $0xa0] sm:$0xff] %vm1725_vm1, %v1679_v58  ;;  %v2102_v39 = vadd.f32 %v2101_v12, %v2100_v51 }
 0x374   : > { %v2103_v33 = vpop.f32.mrf.mxu1 }
 0x375   : > { %v1682_v14 = vadd.f32 %v2102_v39, %v1457_v45 }
 0x376   : > { %v2104_v9 = vpop.f32.mrf.mxu1 }
 0x377   : > { %1747 = vst.msk [vmem:[%s3122_s9 + $0xa8] sm:$0xff] %vm1725_vm1, %v1682_v14  ;;  %v2105_v37 = vadd.f32 %v2104_v9, %v2103_v33 }
 0x378   : > { %v2106_v28 = vpop.f32.mrf.mxu1 }
 0x379   : > { %v1687_v48 = vadd.f32 %v2105_v37, %v1458_v44 }
 0x37a   : > { %v2107_v10 = vpop.f32.mrf.mxu1 }
 0x37b   : > { %1748 = vst.msk [vmem:[%s3122_s9 + $0xb0] sm:$0xff] %vm1725_vm1, %v1687_v48  ;;  %v2108_v52 = vadd.f32 %v2107_v10, %v2106_v28 }
 0x37d   : > { %v1690_v34 = vadd.f32 %v2108_v52, %v1459_v54 }
 0x37f   : > { %1749 = vst.msk [vmem:[%s3122_s9 + $0xb8] sm:$0xff] %vm1725_vm1, %v1690_v34 }
 0x3bd   : > { %v2109_v47 = vpop.f32.mrf.mxu1 }
 0x3bf   : > { %v2110_v31 = vpop.f32.mrf.mxu1 }
 0x3c0   : > { %v2111_v22 = vadd.f32 %v2110_v31, %v2109_v47 }
 0x3c1   : > { %v2112_v8 = vpop.f32.mrf.mxu1 }
 0x3c2   : > { %v1695_v23 = vadd.f32 %v2111_v22, %v1460_v57 }
 0x3c3   : > { %v2113_v38 = vpop.f32.mrf.mxu1 }
 0x3c4   : > { %1750 = vst.msk [vmem:[%s3122_s9 + $0xc0] sm:$0xff] %vm1725_vm1, %v1695_v23  ;;  %v2114_v60 = vadd.f32 %v2113_v38, %v2112_v8 }
 0x3c5   : > { %v2115_v15 = vpop.f32.mrf.mxu1 }
 0x3c6   : > { %v1698_v3 = vadd.f32 %v2114_v60, %v1461_v53 }
 0x3c7   : > { %v2116_v19 = vpop.f32.mrf.mxu1 }
 0x3c8   : > { %1751 = vst.msk [vmem:[%s3122_s9 + $0xc8] sm:$0xff] %vm1725_vm1, %v1698_v3  ;;  %v2117_v32 = vadd.f32 %v2116_v19, %v2115_v15 }
 0x3c9   : > { %v2118_v43 = vpop.f32.mrf.mxu1 }
 0x3ca   : > { %v1703_v56 = vadd.f32 %v2117_v32, %v1462_v1 }
 0x3cb   : > { %v2119_v6 = vpop.f32.mrf.mxu1 }
 0x3cc   : > { %1752 = vst.msk [vmem:[%s3122_s9 + $0xd0] sm:$0xff] %vm1725_vm1, %v1703_v56  ;;  %v2120_v24 = vadd.f32 %v2119_v6, %v2118_v43 }
 0x3cd   : > { %v2121_v61 = vpop.f32.mrf.mxu1 }
 0x3ce   : > { %v1706_v55 = vadd.f32 %v2120_v24, %v1463_v40 }
 0x3cf   : > { %v2122_v4 = vpop.f32.mrf.mxu1 }
 0x3d0   : > { %1753 = vst.msk [vmem:[%s3122_s9 + $0xd8] sm:$0xff] %vm1725_vm1, %v1706_v55  ;;  %v2123_v50 = vadd.f32 %v2122_v4, %v2121_v61 }
 0x3d1   : > { %v2124_v21 = vpop.f32.mrf.mxu1 }
 0x3d2   : > { %v1711_v35 = vadd.f32 %v2123_v50, %v1464_v49 }
 0x3d3   : > { %v2125_v63 = vpop.f32.mrf.mxu1 }
 0x3d4   : > { %1754 = vst.msk [vmem:[%s3122_s9 + $0xe0] sm:$0xff] %vm1725_vm1, %v1711_v35  ;;  %v2126_v26 = vadd.f32 %v2125_v63, %v2124_v21 }
 0x3d5   : > { %v2127_v27 = vpop.f32.mrf.mxu1 }
 0x3d6   : > { %v1714_v0 = vadd.f32 %v2126_v26, %v1465_v30 }
 0x3d7   : > { %v2128_v13 = vpop.f32.mrf.mxu1 }
 0x3d8   : > { %1755 = vst.msk [vmem:[%s3122_s9 + $0xe8] sm:$0xff] %vm1725_vm1, %v1714_v0  ;;  %v2129_v2 = vadd.f32 %v2128_v13, %v2127_v27 }
 0x3d9   : > { %v2130_v59 = vpop.f32.mrf.mxu1 }
 0x3da   : > { %v1719_v41 = vadd.f32 %v2129_v2, %v1466_v7 }
 0x3db   : > { %v2131_v5 = vpop.f32.mrf.mxu1 }
 0x3dc   : > { %1756 = vst.msk [vmem:[%s3122_s9 + $0xf0] sm:$0xff] %vm1725_vm1, %v1719_v41  ;;  %v2132_v62 = vadd.f32 %v2131_v5, %v2130_v59 }
 0x3de   : > { %v1722_v16 = vadd.f32 %v2132_v62, %v1467_v46 }
 0x3e0   : > { %1757 = vst.msk [vmem:[%s3122_s9 + $0xf8] sm:$0xff] %vm1725_vm1, %v1722_v16 }
 0x3e1 PF: > { %s14_s17 = sadd.s32 1, %s2427_s17   ;;  %s3278_s15 = smov %s2423_s16 }
 0x3e2   : > { %p11_p5 = scmp.ge.s32.totalorder %s14_s17, 4   ;;  %s3279_s16 = smov %s3281_s18 }
 0x3e4   :  { %13 = sbr.rel (!%p11_p5) target bundleno = 2 (0x2), region = 75 }

</bundles_post_ra>
